<compile_context>
chip_gen: v7x
topology: tpu7x:2x2x1
jax: 0.10.0
libtpu: 0.0.40
codegen_flags: <defaults>
</compile_context>

<pallas_src>
import numpy as np
import jax
import jax.numpy as jnp
from jax.experimental import pallas as pl
from jax.experimental.pallas import tpu as pltpu

BN_EPS = 1e-5  # nn.BatchNorm2d default eps


# ------------------------------ fused kernel --------------------------------
def _instance_counter_kernel(x4_ref, shs_ref, w1_ref, b1_ref, w2_ref, b2_ref,
                             wl_ref, ind_ref, bl_ref, out_ref):
    S = x4_ref.shape[1]            # pooled spatial positions (Hh*Wh)
    BF = w1_ref.shape[-1]          # batch-folded output channels (B*F)

    # --- MaxPool2d(2,2): elementwise max of the four pre-gathered 2x2 corners.
    xp = jnp.maximum(jnp.maximum(x4_ref[0], x4_ref[1]),
                     jnp.maximum(x4_ref[2], x4_ref[3]))          # (S, B*C)

    def conv3x3_bn_relu(h, w_ref, b_ref):
        # All 9 zero-padded spatial shifts of h in ONE MXU matmul: (9S,S)@(S,cols).
        z = jnp.dot(shs_ref[...], h, preferred_element_type=jnp.float32)
        acc = jnp.zeros((S, BF), jnp.float32)
        for t in range(9):                       # unrolled at trace time
            acc = acc + jnp.dot(z[t * S:(t + 1) * S, :], w_ref[t],
                                preferred_element_type=jnp.float32)
        return jnp.maximum(acc + b_ref[...], 0.0)    # bias has BN folded in

    h1 = conv3x3_bn_relu(xp, w1_ref, b1_ref)         # (S, B*F)
    h2 = conv3x3_bn_relu(h1, w2_ref, b2_ref)         # (S, B*F)

    # --- AdaptiveAvgPool2d((1,1)) + Linear(F,1) + Sigmoid, all batches at once.
    pooled = jnp.mean(h2, axis=0, keepdims=True)                       # (1, B*F)
    logit = jnp.dot(pooled * wl_ref[...], ind_ref[...],
                    preferred_element_type=jnp.float32) + bl_ref[...]  # (1, B)
    out_ref[...] = 1.0 / (1.0 + jnp.exp(-logit))


# --------------------------- constant-matrix glue ----------------------------
def _conv_shift_stack(Hs, Ws):
    """(9*S, S) 0/1 matrix; row block t maps output pos -> zero-padded source pos
    for conv tap t = kh*3 + kw."""
    S = Hs * Ws
    mats = np.zeros((9, S, S), np.float32)
    taps = [(dy, dx) for dy in (-1, 0, 1) for dx in (-1, 0, 1)]
    for t, (dy, dx) in enumerate(taps):
        for h in range(Hs):
            for w in range(Ws):
                hs, ws = h + dy, w + dx
                if 0 <= hs < Hs and 0 <= ws < Ws:
                    mats[t, h * Ws + w, hs * Ws + ws] = 1.0
    return jnp.asarray(mats.reshape(9 * S, S))


def _fold_conv_bn_blockdiag(w, b, gamma, beta, mean, var, B):
    """Fold eval-mode BatchNorm into a conv and expand to a batch block-diagonal
    weight.  w: (F, Cin, 3, 3) OIHW.  Returns (9, B*Cin, B*F) weights and (1, B*F)
    effective bias (batch folded onto the lane axis as b*F + f)."""
    Fo, Cin = w.shape[0], w.shape[1]
    scale = gamma / jnp.sqrt(var + BN_EPS)                             # (F,)
    w_taps = (jnp.transpose(w, (2, 3, 1, 0)).reshape(9, Cin, Fo)
              * scale[None, None, :])                                  # (9, Cin, F)
    b_eff = ((b - mean) * scale + beta).reshape(1, Fo)                 # (1, F)
    eye_b = jnp.eye(B, dtype=jnp.float32)
    w_bd = jnp.einsum("tcf,ab->tacbf", w_taps, eye_b).reshape(9, B * Cin, B * Fo)
    b_bd = jnp.tile(b_eff, (1, B))                                     # (1, B*F)
    return w_bd.astype(jnp.float32), b_bd.astype(jnp.float32)


# --------------------------------- wrapper -----------------------------------
def instance_counter_forward(x, params):
    B, C, H, W = x.shape
    Fo = params["conv1_w"].shape[0]
    Hh, Wh = H // 2, W // 2
    S = Hh * Wh
    BC, BF = B * C, B * Fo

    x = x.astype(jnp.float32)
    # layout glue only: pre-gather the four 2x2-window corners and fold batch onto
    # the lane axis (column index = b*C + c).
    corners = [x[:, :, dy::2, dx::2] for dy in (0, 1) for dx in (0, 1)]  # (B,C,Hh,Wh)
    x4 = jnp.stack(corners, axis=0)                                      # (4,B,C,Hh,Wh)
    x4 = jnp.transpose(x4, (0, 3, 4, 1, 2)).reshape(4, S, BC)

    shs = _conv_shift_stack(Hh, Wh)                                      # (9S, S)

    # TODO(synk): BatchNorm is implemented in inference mode (running statistics
    # folded into the conv); training-mode batch statistics are not reproduced.
    w1, b1 = _fold_conv_bn_blockdiag(params["conv1_w"], params["conv1_b"],
                                     params["bn1_gamma"], params["bn1_beta"],
                                     params["bn1_mean"], params["bn1_var"], B)
    w2, b2 = _fold_conv_bn_blockdiag(params["conv2_w"], params["conv2_b"],
                                     params["bn2_gamma"], params["bn2_beta"],
                                     params["bn2_mean"], params["bn2_var"], B)
    wl = jnp.tile(params["lin_w"].reshape(1, Fo).astype(jnp.float32), (1, B))  # (1,BF)
    ind = jnp.kron(jnp.eye(B, dtype=jnp.float32),
                   jnp.ones((Fo, 1), jnp.float32))                       # (BF, B)
    bl = params["lin_b"].reshape(1, 1).astype(jnp.float32)

    out = pl.pallas_call(
        _instance_counter_kernel,
        out_shape=jax.ShapeDtypeStruct((1, B), jnp.float32),
        grid=(1,),
        in_specs=[
            pl.BlockSpec((4, S, BC), lambda i: (0, 0, 0)),    # pooling corner slabs
            pl.BlockSpec((9 * S, S), lambda i: (0, 0)),       # stacked conv shifts
            pl.BlockSpec((9, BC, BF), lambda i: (0, 0, 0)),   # conv1 (BN-folded, blkdiag)
            pl.BlockSpec((1, BF), lambda i: (0, 0)),          # bias1
            pl.BlockSpec((9, BF, BF), lambda i: (0, 0, 0)),   # conv2 (BN-folded, blkdiag)
            pl.BlockSpec((1, BF), lambda i: (0, 0)),          # bias2
            pl.BlockSpec((1, BF), lambda i: (0, 0)),          # linear weight (tiled)
            pl.BlockSpec((BF, B), lambda i: (0, 0)),          # per-batch sum indicator
            pl.BlockSpec((1, 1), lambda i: (0, 0)),           # linear bias
        ],
        out_specs=pl.BlockSpec((1, B), lambda i: (0, 0)),
        compiler_params=pltpu.CompilerParams(dimension_semantics=("arbitrary",)),
    )(x4, shs, w1, b1, w2, b2, wl, ind, bl)

    return out.reshape(B, 1)


# ----------------------------- pure-JAX reference ----------------------------
def reference_forward(x, params):
    B, C, H, W = x.shape
    xp = x.reshape(B, C, H // 2, 2, W // 2, 2).max(axis=(3, 5))   # MaxPool2d(2,2)

    def conv_bn_relu(h, w, b, gamma, beta, mean, var):
        y = jax.lax.conv_general_dilated(
            h, w, window_strides=(1, 1), padding=((1, 1), (1, 1)),
            dimension_numbers=("NCHW", "OIHW", "NCHW"))
        y = y + b[None, :, None, None]
        y = (y - mean[None, :, None, None]) / jnp.sqrt(var[None, :, None, None] + BN_EPS)
        y = y * gamma[None, :, None, None] + beta[None, :, None, None]
        return jnp.maximum(y, 0.0)

    h = conv_bn_relu(xp, params["conv1_w"], params["conv1_b"],
                     params["bn1_gamma"], params["bn1_beta"],
                     params["bn1_mean"], params["bn1_var"])
    h = conv_bn_relu(h, params["conv2_w"], params["conv2_b"],
                     params["bn2_gamma"], params["bn2_beta"],
                     params["bn2_mean"], params["bn2_var"])
    pooled = h.mean(axis=(2, 3))                                   # (B, F)
    logit = pooled @ params["lin_w"].T + params["lin_b"]           # (B, 1)
    return jax.nn.sigmoid(logit)


if __name__ == "__main__":
    B, C, H, W = 2, 4, 16, 16   # input_n_filters=4
    F = 16                      # out_chs=16

    key = jax.random.PRNGKey(0)
    ks = jax.random.split(key, 16)
    params = {
        "conv1_w": 0.3 * jax.random.normal(ks[0], (F, C, 3, 3), jnp.float32),
        "conv1_b": 0.1 * jax.random.normal(ks[1], (F,), jnp.float32),
        "bn1_gamma": 1.0 + 0.1 * jax.random.normal(ks[2], (F,), jnp.float32),
        "bn1_beta": 0.1 * jax.random.normal(ks[3], (F,), jnp.float32),
        "bn1_mean": 0.1 * jax.random.normal(ks[4], (F,), jnp.float32),
        "bn1_var": jnp.abs(1.0 + 0.1 * jax.random.normal(ks[5], (F,), jnp.float32)),
        "conv2_w": 0.3 * jax.random.normal(ks[6], (F, F, 3, 3), jnp.float32),
        "conv2_b": 0.1 * jax.random.normal(ks[7], (F,), jnp.float32),
        "bn2_gamma": 1.0 + 0.1 * jax.random.normal(ks[8], (F,), jnp.float32),
        "bn2_beta": 0.1 * jax.random.normal(ks[9], (F,), jnp.float32),
        "bn2_mean": 0.1 * jax.random.normal(ks[10], (F,), jnp.float32),
        "bn2_var": jnp.abs(1.0 + 0.1 * jax.random.normal(ks[11], (F,), jnp.float32)),
        "lin_w": 0.2 * jax.random.normal(ks[12], (1, F), jnp.float32),
        "lin_b": 0.1 * jax.random.normal(ks[13], (1,), jnp.float32),
    }
    x = jax.random.normal(ks[15], (B, C, H, W), jnp.float32)

    run = jax.jit(lambda xx: instance_counter_forward(xx, params))
    out = jax.block_until_ready(run(x))

    ref = reference_forward(x, params)
    assert out.shape == (B, 1), out.shape
    assert jnp.allclose(out, ref, atol=1e-3, rtol=1e-3), \
        float(jnp.max(jnp.abs(out - ref)))
    print("KERNEL_OK")
</pallas_src>

<mosaic_0001>
module attributes {stable_mosaic.version = 11 : i64} {
  func.func @_instance_counter_kernel(%arg0: i32, %arg1: memref<4x64x8xf32, #tpu.memory_space<vmem>>, %arg2: memref<576x64xf32, #tpu.memory_space<vmem>>, %arg3: memref<9x8x32xf32, #tpu.memory_space<vmem>>, %arg4: memref<1x32xf32, #tpu.memory_space<vmem>>, %arg5: memref<9x32x32xf32, #tpu.memory_space<vmem>>, %arg6: memref<1x32xf32, #tpu.memory_space<vmem>>, %arg7: memref<1x32xf32, #tpu.memory_space<vmem>>, %arg8: memref<32x2xf32, #tpu.memory_space<vmem>>, %arg9: memref<1x1xf32, #tpu.memory_space<vmem>>, %arg10: memref<1x2xf32, #tpu.memory_space<vmem>>) attributes {dimension_semantics = [#tpu.dimension_semantics<arbitrary>], iteration_bounds = array<i64: 1>, scalar_prefetch = 0 : i64, scratch_operands = 0 : i64, tpu.core_type = #tpu.core_type<tc>, window_params = [{pipeline_mode = #tpu.pipeline_mode<synchronous>, transform_indices = @transform_0, window_bounds = array<i64: 4, 64, 8>}, {pipeline_mode = #tpu.pipeline_mode<synchronous>, transform_indices = @transform_1, window_bounds = array<i64: 576, 64>}, {pipeline_mode = #tpu.pipeline_mode<synchronous>, transform_indices = @transform_2, window_bounds = array<i64: 9, 8, 32>}, {pipeline_mode = #tpu.pipeline_mode<synchronous>, transform_indices = @transform_3, window_bounds = array<i64: 1, 32>}, {pipeline_mode = #tpu.pipeline_mode<synchronous>, transform_indices = @transform_4, window_bounds = array<i64: 9, 32, 32>}, {pipeline_mode = #tpu.pipeline_mode<synchronous>, transform_indices = @transform_5, window_bounds = array<i64: 1, 32>}, {pipeline_mode = #tpu.pipeline_mode<synchronous>, transform_indices = @transform_6, window_bounds = array<i64: 1, 32>}, {pipeline_mode = #tpu.pipeline_mode<synchronous>, transform_indices = @transform_7, window_bounds = array<i64: 32, 2>}, {pipeline_mode = #tpu.pipeline_mode<synchronous>, transform_indices = @transform_8, window_bounds = array<i64: 1, 1>}, {pipeline_mode = #tpu.pipeline_mode<synchronous>, transform_indices = @transform_9, window_bounds = array<i64: 1, 2>}]} {
    %c0 = arith.constant 0 : index
    %c0_0 = arith.constant 0 : index
    %c0_1 = arith.constant 0 : index
    %0 = vector.load %arg1[%c0, %c0_0, %c0_1] : memref<4x64x8xf32, #tpu.memory_space<vmem>>, vector<1x64x8xf32>
    %1 = vector.shape_cast %0 : vector<1x64x8xf32> to vector<64x8xf32>
    %c1 = arith.constant 1 : index
    %c0_2 = arith.constant 0 : index
    %c0_3 = arith.constant 0 : index
    %2 = vector.load %arg1[%c1, %c0_2, %c0_3] : memref<4x64x8xf32, #tpu.memory_space<vmem>>, vector<1x64x8xf32>
    %3 = vector.shape_cast %2 : vector<1x64x8xf32> to vector<64x8xf32>
    %4 = arith.maximumf %1, %3 : vector<64x8xf32>
    %c2 = arith.constant 2 : index
    %c0_4 = arith.constant 0 : index
    %c0_5 = arith.constant 0 : index
    %5 = vector.load %arg1[%c2, %c0_4, %c0_5] : memref<4x64x8xf32, #tpu.memory_space<vmem>>, vector<1x64x8xf32>
    %6 = vector.shape_cast %5 : vector<1x64x8xf32> to vector<64x8xf32>
    %c3 = arith.constant 3 : index
    %c0_6 = arith.constant 0 : index
    %c0_7 = arith.constant 0 : index
    %7 = vector.load %arg1[%c3, %c0_6, %c0_7] : memref<4x64x8xf32, #tpu.memory_space<vmem>>, vector<1x64x8xf32>
    %8 = vector.shape_cast %7 : vector<1x64x8xf32> to vector<64x8xf32>
    %9 = arith.maximumf %6, %8 : vector<64x8xf32>
    %10 = arith.maximumf %4, %9 : vector<64x8xf32>
    %c0_8 = arith.constant 0 : index
    %c0_9 = arith.constant 0 : index
    %11 = vector.load %arg2[%c0_8, %c0_9] : memref<576x64xf32, #tpu.memory_space<vmem>>, vector<576x64xf32>
    %cst = arith.constant dense<0.000000e+00> : vector<576x8xf32>
    %12 = tpu.matmul %11, %10, %cst {dimension_numbers = #tpu.dot_dimension_numbers<[1], [0], [0], [1], [0, 0, 1, 1], [], []>} : vector<576x64xf32>, vector<64x8xf32>, vector<576x8xf32> -> vector<576x8xf32>
    %cst_10 = arith.constant 0.000000e+00 : f32
    %13 = vector.broadcast %cst_10 : f32 to vector<64x32xf32>
    %14 = vector.extract_strided_slice %12 {offsets = [0, 0], sizes = [64, 8], strides = [1, 1]} : vector<576x8xf32> to vector<64x8xf32>
    %c0_11 = arith.constant 0 : index
    %c0_12 = arith.constant 0 : index
    %c0_13 = arith.constant 0 : index
    %15 = vector.load %arg3[%c0_11, %c0_12, %c0_13] : memref<9x8x32xf32, #tpu.memory_space<vmem>>, vector<1x8x32xf32>
    %16 = vector.shape_cast %15 : vector<1x8x32xf32> to vector<8x32xf32>
    %cst_14 = arith.constant dense<0.000000e+00> : vector<64x32xf32>
    %17 = tpu.matmul %14, %16, %cst_14 {dimension_numbers = #tpu.dot_dimension_numbers<[1], [0], [0], [1], [0, 0, 1, 1], [], []>} : vector<64x8xf32>, vector<8x32xf32>, vector<64x32xf32> -> vector<64x32xf32>
    %18 = arith.addf %13, %17 : vector<64x32xf32>
    %19 = vector.extract_strided_slice %12 {offsets = [64, 0], sizes = [64, 8], strides = [1, 1]} : vector<576x8xf32> to vector<64x8xf32>
    %c1_15 = arith.constant 1 : index
    %c0_16 = arith.constant 0 : index
    %c0_17 = arith.constant 0 : index
    %20 = vector.load %arg3[%c1_15, %c0_16, %c0_17] : memref<9x8x32xf32, #tpu.memory_space<vmem>>, vector<1x8x32xf32>
    %21 = vector.shape_cast %20 : vector<1x8x32xf32> to vector<8x32xf32>
    %cst_18 = arith.constant dense<0.000000e+00> : vector<64x32xf32>
    %22 = tpu.matmul %19, %21, %cst_18 {dimension_numbers = #tpu.dot_dimension_numbers<[1], [0], [0], [1], [0, 0, 1, 1], [], []>} : vector<64x8xf32>, vector<8x32xf32>, vector<64x32xf32> -> vector<64x32xf32>
    %23 = arith.addf %18, %22 : vector<64x32xf32>
    %24 = vector.extract_strided_slice %12 {offsets = [128, 0], sizes = [64, 8], strides = [1, 1]} : vector<576x8xf32> to vector<64x8xf32>
    %c2_19 = arith.constant 2 : index
    %c0_20 = arith.constant 0 : index
    %c0_21 = arith.constant 0 : index
    %25 = vector.load %arg3[%c2_19, %c0_20, %c0_21] : memref<9x8x32xf32, #tpu.memory_space<vmem>>, vector<1x8x32xf32>
    %26 = vector.shape_cast %25 : vector<1x8x32xf32> to vector<8x32xf32>
    %cst_22 = arith.constant dense<0.000000e+00> : vector<64x32xf32>
    %27 = tpu.matmul %24, %26, %cst_22 {dimension_numbers = #tpu.dot_dimension_numbers<[1], [0], [0], [1], [0, 0, 1, 1], [], []>} : vector<64x8xf32>, vector<8x32xf32>, vector<64x32xf32> -> vector<64x32xf32>
    %28 = arith.addf %23, %27 : vector<64x32xf32>
    %29 = vector.extract_strided_slice %12 {offsets = [192, 0], sizes = [64, 8], strides = [1, 1]} : vector<576x8xf32> to vector<64x8xf32>
    %c3_23 = arith.constant 3 : index
    %c0_24 = arith.constant 0 : index
    %c0_25 = arith.constant 0 : index
    %30 = vector.load %arg3[%c3_23, %c0_24, %c0_25] : memref<9x8x32xf32, #tpu.memory_space<vmem>>, vector<1x8x32xf32>
    %31 = vector.shape_cast %30 : vector<1x8x32xf32> to vector<8x32xf32>
    %cst_26 = arith.constant dense<0.000000e+00> : vector<64x32xf32>
    %32 = tpu.matmul %29, %31, %cst_26 {dimension_numbers = #tpu.dot_dimension_numbers<[1], [0], [0], [1], [0, 0, 1, 1], [], []>} : vector<64x8xf32>, vector<8x32xf32>, vector<64x32xf32> -> vector<64x32xf32>
    %33 = arith.addf %28, %32 : vector<64x32xf32>
    %34 = vector.extract_strided_slice %12 {offsets = [256, 0], sizes = [64, 8], strides = [1, 1]} : vector<576x8xf32> to vector<64x8xf32>
    %c4 = arith.constant 4 : index
    %c0_27 = arith.constant 0 : index
    %c0_28 = arith.constant 0 : index
    %35 = vector.load %arg3[%c4, %c0_27, %c0_28] : memref<9x8x32xf32, #tpu.memory_space<vmem>>, vector<1x8x32xf32>
    %36 = vector.shape_cast %35 : vector<1x8x32xf32> to vector<8x32xf32>
    %cst_29 = arith.constant dense<0.000000e+00> : vector<64x32xf32>
    %37 = tpu.matmul %34, %36, %cst_29 {dimension_numbers = #tpu.dot_dimension_numbers<[1], [0], [0], [1], [0, 0, 1, 1], [], []>} : vector<64x8xf32>, vector<8x32xf32>, vector<64x32xf32> -> vector<64x32xf32>
    %38 = arith.addf %33, %37 : vector<64x32xf32>
    %39 = vector.extract_strided_slice %12 {offsets = [320, 0], sizes = [64, 8], strides = [1, 1]} : vector<576x8xf32> to vector<64x8xf32>
    %c5 = arith.constant 5 : index
    %c0_30 = arith.constant 0 : index
    %c0_31 = arith.constant 0 : index
    %40 = vector.load %arg3[%c5, %c0_30, %c0_31] : memref<9x8x32xf32, #tpu.memory_space<vmem>>, vector<1x8x32xf32>
    %41 = vector.shape_cast %40 : vector<1x8x32xf32> to vector<8x32xf32>
    %cst_32 = arith.constant dense<0.000000e+00> : vector<64x32xf32>
    %42 = tpu.matmul %39, %41, %cst_32 {dimension_numbers = #tpu.dot_dimension_numbers<[1], [0], [0], [1], [0, 0, 1, 1], [], []>} : vector<64x8xf32>, vector<8x32xf32>, vector<64x32xf32> -> vector<64x32xf32>
    %43 = arith.addf %38, %42 : vector<64x32xf32>
    %44 = vector.extract_strided_slice %12 {offsets = [384, 0], sizes = [64, 8], strides = [1, 1]} : vector<576x8xf32> to vector<64x8xf32>
    %c6 = arith.constant 6 : index
    %c0_33 = arith.constant 0 : index
    %c0_34 = arith.constant 0 : index
    %45 = vector.load %arg3[%c6, %c0_33, %c0_34] : memref<9x8x32xf32, #tpu.memory_space<vmem>>, vector<1x8x32xf32>
    %46 = vector.shape_cast %45 : vector<1x8x32xf32> to vector<8x32xf32>
    %cst_35 = arith.constant dense<0.000000e+00> : vector<64x32xf32>
    %47 = tpu.matmul %44, %46, %cst_35 {dimension_numbers = #tpu.dot_dimension_numbers<[1], [0], [0], [1], [0, 0, 1, 1], [], []>} : vector<64x8xf32>, vector<8x32xf32>, vector<64x32xf32> -> vector<64x32xf32>
    %48 = arith.addf %43, %47 : vector<64x32xf32>
    %49 = vector.extract_strided_slice %12 {offsets = [448, 0], sizes = [64, 8], strides = [1, 1]} : vector<576x8xf32> to vector<64x8xf32>
    %c7 = arith.constant 7 : index
    %c0_36 = arith.constant 0 : index
    %c0_37 = arith.constant 0 : index
    %50 = vector.load %arg3[%c7, %c0_36, %c0_37] : memref<9x8x32xf32, #tpu.memory_space<vmem>>, vector<1x8x32xf32>
    %51 = vector.shape_cast %50 : vector<1x8x32xf32> to vector<8x32xf32>
    %cst_38 = arith.constant dense<0.000000e+00> : vector<64x32xf32>
    %52 = tpu.matmul %49, %51, %cst_38 {dimension_numbers = #tpu.dot_dimension_numbers<[1], [0], [0], [1], [0, 0, 1, 1], [], []>} : vector<64x8xf32>, vector<8x32xf32>, vector<64x32xf32> -> vector<64x32xf32>
    %53 = arith.addf %48, %52 : vector<64x32xf32>
    %54 = vector.extract_strided_slice %12 {offsets = [512, 0], sizes = [64, 8], strides = [1, 1]} : vector<576x8xf32> to vector<64x8xf32>
    %c8 = arith.constant 8 : index
    %c0_39 = arith.constant 0 : index
    %c0_40 = arith.constant 0 : index
    %55 = vector.load %arg3[%c8, %c0_39, %c0_40] : memref<9x8x32xf32, #tpu.memory_space<vmem>>, vector<1x8x32xf32>
    %56 = vector.shape_cast %55 : vector<1x8x32xf32> to vector<8x32xf32>
    %cst_41 = arith.constant dense<0.000000e+00> : vector<64x32xf32>
    %57 = tpu.matmul %54, %56, %cst_41 {dimension_numbers = #tpu.dot_dimension_numbers<[1], [0], [0], [1], [0, 0, 1, 1], [], []>} : vector<64x8xf32>, vector<8x32xf32>, vector<64x32xf32> -> vector<64x32xf32>
    %58 = arith.addf %53, %57 : vector<64x32xf32>
    %c0_42 = arith.constant 0 : index
    %c0_43 = arith.constant 0 : index
    %59 = vector.load %arg4[%c0_42, %c0_43] : memref<1x32xf32, #tpu.memory_space<vmem>>, vector<1x32xf32>
    %60 = vector.broadcast %59 : vector<1x32xf32> to vector<64x32xf32>
    %61 = arith.addf %58, %60 : vector<64x32xf32>
    %cst_44 = arith.constant 0.000000e+00 : f32
    %62 = vector.broadcast %cst_44 : f32 to vector<64x32xf32>
    %63 = arith.maximumf %61, %62 : vector<64x32xf32>
    %c0_45 = arith.constant 0 : index
    %c0_46 = arith.constant 0 : index
    %64 = vector.load %arg2[%c0_45, %c0_46] : memref<576x64xf32, #tpu.memory_space<vmem>>, vector<576x64xf32>
    %cst_47 = arith.constant dense<0.000000e+00> : vector<576x32xf32>
    %65 = tpu.matmul %64, %63, %cst_47 {dimension_numbers = #tpu.dot_dimension_numbers<[1], [0], [0], [1], [0, 0, 1, 1], [], []>} : vector<576x64xf32>, vector<64x32xf32>, vector<576x32xf32> -> vector<576x32xf32>
    %cst_48 = arith.constant 0.000000e+00 : f32
    %66 = vector.broadcast %cst_48 : f32 to vector<64x32xf32>
    %67 = vector.extract_strided_slice %65 {offsets = [0, 0], sizes = [64, 32], strides = [1, 1]} : vector<576x32xf32> to vector<64x32xf32>
    %c0_49 = arith.constant 0 : index
    %c0_50 = arith.constant 0 : index
    %c0_51 = arith.constant 0 : index
    %68 = vector.load %arg5[%c0_49, %c0_50, %c0_51] : memref<9x32x32xf32, #tpu.memory_space<vmem>>, vector<1x32x32xf32>
    %69 = vector.shape_cast %68 : vector<1x32x32xf32> to vector<32x32xf32>
    %cst_52 = arith.constant dense<0.000000e+00> : vector<64x32xf32>
    %70 = tpu.matmul %67, %69, %cst_52 {dimension_numbers = #tpu.dot_dimension_numbers<[1], [0], [0], [1], [0, 0, 1, 1], [], []>} : vector<64x32xf32>, vector<32x32xf32>, vector<64x32xf32> -> vector<64x32xf32>
    %71 = arith.addf %66, %70 : vector<64x32xf32>
    %72 = vector.extract_strided_slice %65 {offsets = [64, 0], sizes = [64, 32], strides = [1, 1]} : vector<576x32xf32> to vector<64x32xf32>
    %c1_53 = arith.constant 1 : index
    %c0_54 = arith.constant 0 : index
    %c0_55 = arith.constant 0 : index
    %73 = vector.load %arg5[%c1_53, %c0_54, %c0_55] : memref<9x32x32xf32, #tpu.memory_space<vmem>>, vector<1x32x32xf32>
    %74 = vector.shape_cast %73 : vector<1x32x32xf32> to vector<32x32xf32>
    %cst_56 = arith.constant dense<0.000000e+00> : vector<64x32xf32>
    %75 = tpu.matmul %72, %74, %cst_56 {dimension_numbers = #tpu.dot_dimension_numbers<[1], [0], [0], [1], [0, 0, 1, 1], [], []>} : vector<64x32xf32>, vector<32x32xf32>, vector<64x32xf32> -> vector<64x32xf32>
    %76 = arith.addf %71, %75 : vector<64x32xf32>
    %77 = vector.extract_strided_slice %65 {offsets = [128, 0], sizes = [64, 32], strides = [1, 1]} : vector<576x32xf32> to vector<64x32xf32>
    %c2_57 = arith.constant 2 : index
    %c0_58 = arith.constant 0 : index
    %c0_59 = arith.constant 0 : index
    %78 = vector.load %arg5[%c2_57, %c0_58, %c0_59] : memref<9x32x32xf32, #tpu.memory_space<vmem>>, vector<1x32x32xf32>
    %79 = vector.shape_cast %78 : vector<1x32x32xf32> to vector<32x32xf32>
    %cst_60 = arith.constant dense<0.000000e+00> : vector<64x32xf32>
    %80 = tpu.matmul %77, %79, %cst_60 {dimension_numbers = #tpu.dot_dimension_numbers<[1], [0], [0], [1], [0, 0, 1, 1], [], []>} : vector<64x32xf32>, vector<32x32xf32>, vector<64x32xf32> -> vector<64x32xf32>
    %81 = arith.addf %76, %80 : vector<64x32xf32>
    %82 = vector.extract_strided_slice %65 {offsets = [192, 0], sizes = [64, 32], strides = [1, 1]} : vector<576x32xf32> to vector<64x32xf32>
    %c3_61 = arith.constant 3 : index
    %c0_62 = arith.constant 0 : index
    %c0_63 = arith.constant 0 : index
    %83 = vector.load %arg5[%c3_61, %c0_62, %c0_63] : memref<9x32x32xf32, #tpu.memory_space<vmem>>, vector<1x32x32xf32>
    %84 = vector.shape_cast %83 : vector<1x32x32xf32> to vector<32x32xf32>
    %cst_64 = arith.constant dense<0.000000e+00> : vector<64x32xf32>
    %85 = tpu.matmul %82, %84, %cst_64 {dimension_numbers = #tpu.dot_dimension_numbers<[1], [0], [0], [1], [0, 0, 1, 1], [], []>} : vector<64x32xf32>, vector<32x32xf32>, vector<64x32xf32> -> vector<64x32xf32>
    %86 = arith.addf %81, %85 : vector<64x32xf32>
    %87 = vector.extract_strided_slice %65 {offsets = [256, 0], sizes = [64, 32], strides = [1, 1]} : vector<576x32xf32> to vector<64x32xf32>
    %c4_65 = arith.constant 4 : index
    %c0_66 = arith.constant 0 : index
    %c0_67 = arith.constant 0 : index
    %88 = vector.load %arg5[%c4_65, %c0_66, %c0_67] : memref<9x32x32xf32, #tpu.memory_space<vmem>>, vector<1x32x32xf32>
    %89 = vector.shape_cast %88 : vector<1x32x32xf32> to vector<32x32xf32>
    %cst_68 = arith.constant dense<0.000000e+00> : vector<64x32xf32>
    %90 = tpu.matmul %87, %89, %cst_68 {dimension_numbers = #tpu.dot_dimension_numbers<[1], [0], [0], [1], [0, 0, 1, 1], [], []>} : vector<64x32xf32>, vector<32x32xf32>, vector<64x32xf32> -> vector<64x32xf32>
    %91 = arith.addf %86, %90 : vector<64x32xf32>
    %92 = vector.extract_strided_slice %65 {offsets = [320, 0], sizes = [64, 32], strides = [1, 1]} : vector<576x32xf32> to vector<64x32xf32>
    %c5_69 = arith.constant 5 : index
    %c0_70 = arith.constant 0 : index
    %c0_71 = arith.constant 0 : index
    %93 = vector.load %arg5[%c5_69, %c0_70, %c0_71] : memref<9x32x32xf32, #tpu.memory_space<vmem>>, vector<1x32x32xf32>
    %94 = vector.shape_cast %93 : vector<1x32x32xf32> to vector<32x32xf32>
    %cst_72 = arith.constant dense<0.000000e+00> : vector<64x32xf32>
    %95 = tpu.matmul %92, %94, %cst_72 {dimension_numbers = #tpu.dot_dimension_numbers<[1], [0], [0], [1], [0, 0, 1, 1], [], []>} : vector<64x32xf32>, vector<32x32xf32>, vector<64x32xf32> -> vector<64x32xf32>
    %96 = arith.addf %91, %95 : vector<64x32xf32>
    %97 = vector.extract_strided_slice %65 {offsets = [384, 0], sizes = [64, 32], strides = [1, 1]} : vector<576x32xf32> to vector<64x32xf32>
    %c6_73 = arith.constant 6 : index
    %c0_74 = arith.constant 0 : index
    %c0_75 = arith.constant 0 : index
    %98 = vector.load %arg5[%c6_73, %c0_74, %c0_75] : memref<9x32x32xf32, #tpu.memory_space<vmem>>, vector<1x32x32xf32>
    %99 = vector.shape_cast %98 : vector<1x32x32xf32> to vector<32x32xf32>
    %cst_76 = arith.constant dense<0.000000e+00> : vector<64x32xf32>
    %100 = tpu.matmul %97, %99, %cst_76 {dimension_numbers = #tpu.dot_dimension_numbers<[1], [0], [0], [1], [0, 0, 1, 1], [], []>} : vector<64x32xf32>, vector<32x32xf32>, vector<64x32xf32> -> vector<64x32xf32>
    %101 = arith.addf %96, %100 : vector<64x32xf32>
    %102 = vector.extract_strided_slice %65 {offsets = [448, 0], sizes = [64, 32], strides = [1, 1]} : vector<576x32xf32> to vector<64x32xf32>
    %c7_77 = arith.constant 7 : index
    %c0_78 = arith.constant 0 : index
    %c0_79 = arith.constant 0 : index
    %103 = vector.load %arg5[%c7_77, %c0_78, %c0_79] : memref<9x32x32xf32, #tpu.memory_space<vmem>>, vector<1x32x32xf32>
    %104 = vector.shape_cast %103 : vector<1x32x32xf32> to vector<32x32xf32>
    %cst_80 = arith.constant dense<0.000000e+00> : vector<64x32xf32>
    %105 = tpu.matmul %102, %104, %cst_80 {dimension_numbers = #tpu.dot_dimension_numbers<[1], [0], [0], [1], [0, 0, 1, 1], [], []>} : vector<64x32xf32>, vector<32x32xf32>, vector<64x32xf32> -> vector<64x32xf32>
    %106 = arith.addf %101, %105 : vector<64x32xf32>
    %107 = vector.extract_strided_slice %65 {offsets = [512, 0], sizes = [64, 32], strides = [1, 1]} : vector<576x32xf32> to vector<64x32xf32>
    %c8_81 = arith.constant 8 : index
    %c0_82 = arith.constant 0 : index
    %c0_83 = arith.constant 0 : index
    %108 = vector.load %arg5[%c8_81, %c0_82, %c0_83] : memref<9x32x32xf32, #tpu.memory_space<vmem>>, vector<1x32x32xf32>
    %109 = vector.shape_cast %108 : vector<1x32x32xf32> to vector<32x32xf32>
    %cst_84 = arith.constant dense<0.000000e+00> : vector<64x32xf32>
    %110 = tpu.matmul %107, %109, %cst_84 {dimension_numbers = #tpu.dot_dimension_numbers<[1], [0], [0], [1], [0, 0, 1, 1], [], []>} : vector<64x32xf32>, vector<32x32xf32>, vector<64x32xf32> -> vector<64x32xf32>
    %111 = arith.addf %106, %110 : vector<64x32xf32>
    %c0_85 = arith.constant 0 : index
    %c0_86 = arith.constant 0 : index
    %112 = vector.load %arg6[%c0_85, %c0_86] : memref<1x32xf32, #tpu.memory_space<vmem>>, vector<1x32xf32>
    %113 = vector.broadcast %112 : vector<1x32xf32> to vector<64x32xf32>
    %114 = arith.addf %111, %113 : vector<64x32xf32>
    %cst_87 = arith.constant 0.000000e+00 : f32
    %115 = vector.broadcast %cst_87 : f32 to vector<64x32xf32>
    %116 = arith.maximumf %114, %115 : vector<64x32xf32>
    %cst_88 = arith.constant dense<0.000000e+00> : vector<32xf32>
    %117 = vector.multi_reduction <add>, %116, %cst_88 [0] : vector<64x32xf32> to vector<32xf32>
    %118 = vector.shape_cast %117 : vector<32xf32> to vector<1x32xf32>
    %cst_89 = arith.constant 6.400000e+01 : f32
    %119 = vector.broadcast %cst_89 : f32 to vector<1x32xf32>
    %120 = arith.divf %118, %119 : vector<1x32xf32>
    %c0_90 = arith.constant 0 : index
    %c0_91 = arith.constant 0 : index
    %121 = vector.load %arg7[%c0_90, %c0_91] : memref<1x32xf32, #tpu.memory_space<vmem>>, vector<1x32xf32>
    %122 = arith.mulf %120, %121 : vector<1x32xf32>
    %c0_92 = arith.constant 0 : index
    %c0_93 = arith.constant 0 : index
    %123 = vector.load %arg8[%c0_92, %c0_93] : memref<32x2xf32, #tpu.memory_space<vmem>>, vector<32x2xf32>
    %cst_94 = arith.constant dense<0.000000e+00> : vector<1x2xf32>
    %124 = tpu.matmul %122, %123, %cst_94 {dimension_numbers = #tpu.dot_dimension_numbers<[1], [0], [0], [1], [0, 0, 1, 1], [], []>} : vector<1x32xf32>, vector<32x2xf32>, vector<1x2xf32> -> vector<1x2xf32>
    %c0_95 = arith.constant 0 : index
    %c0_96 = arith.constant 0 : index
    %125 = vector.load %arg9[%c0_95, %c0_96] : memref<1x1xf32, #tpu.memory_space<vmem>>, vector<1x1xf32>
    %126 = vector.broadcast %125 : vector<1x1xf32> to vector<1x2xf32>
    %127 = arith.addf %124, %126 : vector<1x2xf32>
    %cst_97 = arith.constant 0.000000e+00 : f32
    %128 = vector.broadcast %cst_97 : f32 to vector<1x2xf32>
    %129 = arith.subf %128, %127 : vector<1x2xf32>
    %130 = math.exp %129 : vector<1x2xf32>
    %cst_98 = arith.constant 1.000000e+00 : f32
    %131 = vector.broadcast %cst_98 : f32 to vector<1x2xf32>
    %132 = arith.addf %131, %130 : vector<1x2xf32>
    %cst_99 = arith.constant 1.000000e+00 : f32
    %133 = vector.broadcast %cst_99 : f32 to vector<1x2xf32>
    %134 = arith.divf %133, %132 : vector<1x2xf32>
    %c0_100 = arith.constant 0 : index
    %c0_101 = arith.constant 0 : index
    %135 = vector.load %arg10[%c0_100, %c0_101] : memref<1x2xf32, #tpu.memory_space<vmem>>, vector<1x2xf32>
    tpu.vector_store %arg10[%c0_100, %c0_101], %134 {strides = array<i32>} : memref<1x2xf32, #tpu.memory_space<vmem>>, vector<1x2xf32>,
    return
  }
  func.func @transform_0(%arg0: i32) -> (i32, i32, i32) {
    %c0_i32 = arith.constant 0 : i32
    %c0_i32_0 = arith.constant 0 : i32
    %c0_i32_1 = arith.constant 0 : i32
    %c0_i32_2 = arith.constant 0 : i32
    return %c0_i32, %c0_i32_0, %c0_i32_1 : i32, i32, i32
  }
  func.func @transform_1(%arg0: i32) -> (i32, i32) {
    %c0_i32 = arith.constant 0 : i32
    %c0_i32_0 = arith.constant 0 : i32
    %c0_i32_1 = arith.constant 0 : i32
    return %c0_i32, %c0_i32_0 : i32, i32
  }
  func.func @transform_2(%arg0: i32) -> (i32, i32, i32) {
    %c0_i32 = arith.constant 0 : i32
    %c0_i32_0 = arith.constant 0 : i32
    %c0_i32_1 = arith.constant 0 : i32
    %c0_i32_2 = arith.constant 0 : i32
    return %c0_i32, %c0_i32_0, %c0_i32_1 : i32, i32, i32
  }
  func.func @transform_3(%arg0: i32) -> (i32, i32) {
    %c0_i32 = arith.constant 0 : i32
    %c0_i32_0 = arith.constant 0 : i32
    %c0_i32_1 = arith.constant 0 : i32
    return %c0_i32, %c0_i32_0 : i32, i32
  }
  func.func @transform_4(%arg0: i32) -> (i32, i32, i32) {
    %c0_i32 = arith.constant 0 : i32
    %c0_i32_0 = arith.constant 0 : i32
    %c0_i32_1 = arith.constant 0 : i32
    %c0_i32_2 = arith.constant 0 : i32
    return %c0_i32, %c0_i32_0, %c0_i32_1 : i32, i32, i32
  }
  func.func @transform_5(%arg0: i32) -> (i32, i32) {
    %c0_i32 = arith.constant 0 : i32
    %c0_i32_0 = arith.constant 0 : i32
    %c0_i32_1 = arith.constant 0 : i32
    return %c0_i32, %c0_i32_0 : i32, i32
  }
  func.func @transform_6(%arg0: i32) -> (i32, i32) {
    %c0_i32 = arith.constant 0 : i32
    %c0_i32_0 = arith.constant 0 : i32
    %c0_i32_1 = arith.constant 0 : i32
    return %c0_i32, %c0_i32_0 : i32, i32
  }
  func.func @transform_7(%arg0: i32) -> (i32, i32) {
    %c0_i32 = arith.constant 0 : i32
    %c0_i32_0 = arith.constant 0 : i32
    %c0_i32_1 = arith.constant 0 : i32
    return %c0_i32, %c0_i32_0 : i32, i32
  }
  func.func @transform_8(%arg0: i32) -> (i32, i32) {
    %c0_i32 = arith.constant 0 : i32
    %c0_i32_0 = arith.constant 0 : i32
    %c0_i32_1 = arith.constant 0 : i32
    return %c0_i32, %c0_i32_0 : i32, i32
  }
  func.func @transform_9(%arg0: i32) -> (i32, i32) {
    %c0_i32 = arith.constant 0 : i32
    %c0_i32_0 = arith.constant 0 : i32
    %c0_i32_1 = arith.constant 0 : i32
    return %c0_i32, %c0_i32_0 : i32, i32
  }
}

</mosaic_0001>

<bundles_post_ra>
// kernel: _lambda_.1
= control target key start
LH: loop header
LB: loop body
LE: loop exit
PB: predicated region body
PF: predicated region fallthrough
CT: control target
= control target key end

     0   :  { %s6583_s0 = inlined_call_operand.vmem [shape: f32[4,64,8], index: 0, kind: input, shape index: {}]   ;;  %s6584_s1 = inlined_call_operand.vmem [shape: f32[576,64], index: 1, kind: input, shape index: {}]   ;;  %s6585_s2 = inlined_call_operand.vmem [shape: f32[9,8,32], index: 2, kind: input, shape index: {}]   ;;  %s6586_s3 = inlined_call_operand.vmem [shape: f32[1,32], index: 3, kind: input, shape index: {}]   ;;  %s6587_s4 = inlined_call_operand.vmem [shape: f32[9,32,32], index: 4, kind: input, shape index: {}]   ;;  %s6588_s5 = inlined_call_operand.vmem [shape: f32[1,32], index: 5, kind: input, shape index: {}]   ;;  %s6589_s6 = inlined_call_operand.vmem [shape: f32[1,32], index: 6, kind: input, shape index: {}]   ;;  %s6590_s7 = inlined_call_operand.vmem [shape: f32[32,2], index: 7, kind: input, shape index: {}]   ;;  %s6591_s8 = inlined_call_operand.<no memory space> [shape: f32[1,1], index: 8, kind: input, shape index: {}]   ;;  %s6592_s9 = inlined_call_operand.hbm [shape: f32[1,2], index: 9, kind: output, shape index: {}]  }
   0x1   :  { %v14_v0 = vstv %s6591_s8 }
   0x2   :  { %15 = vst [vmem:[#allocation2] sm:$0x1] %v14_v0 }
   0x3   :  { %v35_v1 = vld [vmem:[%s6583_s0] sm:$0xff]  ;;  %v36_v2 = vld [vmem:[%s6583_s0 + $0x8] sm:$0xff]  ;;  %v37_v11 = vld [vmem:[%s6583_s0 + $0x10] sm:$0xff]  ;;  %vm166_vm0 = vcmask 523264  }
   0x4   :  { %v3910_v3 = vld [vmem:[%s6583_s0 + $0x40] sm:$0xff]  ;;  %v3911_v4 = vld [vmem:[%s6583_s0 + $0x48] sm:$0xff]  ;;  %v38_v14 = vld [vmem:[%s6583_s0 + $0x18] sm:$0xff] }
   0x5   :  { %v52_v5 = vmax.f32 %v35_v1, %v3910_v3  ;;  %v3918_v6 = vld [vmem:[%s6583_s0 + $0x80] sm:$0xff]  ;;  %v3919_v7 = vld [vmem:[%s6583_s0 + $0x88] sm:$0xff]  ;;  %v53_v8 = vmax.f32 %v36_v2, %v3911_v4  ;;  %v3912_v15 = vld [vmem:[%s6583_s0 + $0x50] sm:$0xff] }
   0x6   :  { %v3926_v9 = vld [vmem:[%s6583_s0 + $0xc0] sm:$0xff]  ;;  %v3927_v10 = vld [vmem:[%s6583_s0 + $0xc8] sm:$0xff]  ;;  %v3913_v16 = vld [vmem:[%s6583_s0 + $0x58] sm:$0xff]  ;;  %v54_v17 = vmax.f32 %v37_v11, %v3912_v15 }
   0x7   :  { %v78_v12 = vmax.f32 %v3918_v6, %v3926_v9  ;;  %v79_v13 = vmax.f32 %v3919_v7, %v3927_v10  ;;  %v55_v18 = vmax.f32 %v38_v14, %v3913_v16  ;;  %v3920_v19 = vld [vmem:[%s6583_s0 + $0x90] sm:$0xff]  ;;  %v3921_v20 = vld [vmem:[%s6583_s0 + $0x98] sm:$0xff]  ;;  %v39_v26 = vld [vmem:[%s6583_s0 + $0x20] sm:$0xff] }
   0x8   :  { %v3928_v21 = vld [vmem:[%s6583_s0 + $0xd0] sm:$0xff]  ;;  %v3929_v24 = vld [vmem:[%s6583_s0 + $0xd8] sm:$0xff]  ;;  %v40_v27 = vld [vmem:[%s6583_s0 + $0x28] sm:$0xff] }
   0x9   :  { %v86_v22 = vmax.f32 %v52_v5, %v78_v12  ;;  %v87_v23 = vmax.f32 %v53_v8, %v79_v13  ;;  %v80_v25 = vmax.f32 %v3920_v19, %v3928_v21  ;;  %v81_v28 = vmax.f32 %v3921_v20, %v3929_v24  ;;  %v3914_v29 = vld [vmem:[%s6583_s0 + $0x60] sm:$0xff]  ;;  %v3915_v30 = vld [vmem:[%s6583_s0 + $0x68] sm:$0xff]  ;;  %v41_v42 = vld [vmem:[%s6583_s0 + $0x30] sm:$0xff] }
   0xa   :  { %v3922_v31 = vld [vmem:[%s6583_s0 + $0xa0] sm:$0xff]  ;;  %v56_v34 = vmax.f32 %v39_v26, %v3914_v29  ;;  %v57_v35 = vmax.f32 %v40_v27, %v3915_v30  ;;  %v3923_v36 = vld [vmem:[%s6583_s0 + $0xa8] sm:$0xff]  ;;  %v42_v43 = vld [vmem:[%s6583_s0 + $0x38] sm:$0xff] }
   0xb   :  { %v5184_v32 = vpack.c.bf16 %v87_v23, %v86_v22  ;;  %v88_v33 = vmax.f32 %v54_v17, %v80_v25  ;;  %v3930_v37 = vld [vmem:[%s6583_s0 + $0xe0] sm:$0xff]  ;;  %v3931_v38 = vld [vmem:[%s6583_s0 + $0xe8] sm:$0xff]  ;;  %v89_v39 = vmax.f32 %v55_v18, %v81_v28  ;;  %v3916_v44 = vld [vmem:[%s6583_s0 + $0x70] sm:$0xff] }
   0xc   :  { %v82_v40 = vmax.f32 %v3922_v31, %v3930_v37  ;;  %v83_v41 = vmax.f32 %v3923_v36, %v3931_v38  ;;  %v3917_v45 = vld [vmem:[%s6583_s0 + $0x78] sm:$0xff]  ;;  %v58_v46 = vmax.f32 %v41_v42, %v3916_v44  ;;  %v3924_v47 = vld [vmem:[%s6583_s0 + $0xb0] sm:$0xff]  ;;  %v5617_v55 = vld [vmem:[%s6584_s1] sm:$0xff] }
   0xd   :  { %5185 = vmatprep.subr.bf16.mxu0 %v5184_v32  ;;  %v3925_v48 = vld [vmem:[%s6583_s0 + $0xb8] sm:$0xff]  ;;  %v5188_v49 = vpack.c.bf16 %v89_v39, %v88_v33  ;;  %v59_v52 = vmax.f32 %v42_v43, %v3917_v45  ;;  %v3932_v53 = vld [vmem:[%s6583_s0 + $0xf0] sm:$0xff]  ;;  %4635 = vmatprep.mubr.msk.f32.mxu0 %vm166_vm0, %v5617_v55  ;;  %v5624_v62 = vld [vmem:[%s6584_s1 + $0x8] sm:$0xff] }
   0xe   :  { %5187 = vmatpush3.bf16.msra.mxu0 %v5184_v32  ;;  %v90_v50 = vmax.f32 %v56_v34, %v82_v40  ;;  %v91_v51 = vmax.f32 %v57_v35, %v83_v41  ;;  %v3933_v54 = vld [vmem:[%s6583_s0 + $0xf8] sm:$0xff]  ;;  %v84_v56 = vmax.f32 %v3924_v47, %v3932_v53  ;;  %v5629_v63 = vld [vmem:[%s6584_s1 + $0x10] sm:$0xff]  ;;  %v5643_v1 = vld [vmem:[%s6584_s1 + $0x20] sm:$0xff] }
   0xf   :  { %v85_v57 = vmax.f32 %v3925_v48, %v3933_v54  ;;  %5189 = vmatprep.subr.bf16.mxu0 %v5188_v49  ;;  %v5638_v0 = vld [vmem:[%s6584_s1 + $0x18] sm:$0xff]  ;;  %v5652_v2 = vld [vmem:[%s6584_s1 + $0x28] sm:$0xff]  ;;  %v5657_v3 = vld [vmem:[%s6584_s1 + $0x30] sm:$0xff] }
  0x10   :  { %v5192_v58 = vpack.c.bf16 %v91_v51, %v90_v50  ;;  %v92_v59 = vmax.f32 %v58_v46, %v84_v56  ;;  %v5666_v4 = vld [vmem:[%s6584_s1 + $0x38] sm:$0xff] }
  0x11   :  { %v93_v60 = vmax.f32 %v59_v52, %v85_v57 }
  0x12   :  { %5191 = vmatpush3.bf16.msra.mxu0 %v5188_v49 }
  0x13   :  { %5193 = vmatprep.subr.bf16.mxu0 %v5192_v58  ;;  %v5196_v61 = vpack.c.bf16 %v93_v60, %v92_v59 }
  0x16   :  { %5195 = vmatpush3.bf16.msra.mxu0 %v5192_v58 }
  0x17   :  { %5197 = vmatprep.subr.bf16.mxu0 %v5196_v61 }
  0x1a   :  { %5199 = vmatpush3.bf16.msra.mxu0 %v5196_v61 }
  0x1d   :  { %4636 = vmatmul.mubr.msk.f32.vlgmr.msra.gmra.mrb[0].mxu0 %vm166_vm0, %v5624_v62 }
  0x1e   :  { %4638 = vmatprep.mubr.msk.f32.mxu0 %vm166_vm0, %v5629_v63 }
  0x21   :  { %4639 = vmatmul.mubr.msk.f32.gmra.mrb[2].mxu0 %vm166_vm0, %v5638_v0 }
  0x22   :  { %4641 = vmatprep.mubr.msk.f32.mxu0 %vm166_vm0, %v5643_v1 }
  0x25   :  { %4642 = vmatmul.mubr.msk.f32.gmra.mrb[4].mxu0 %vm166_vm0, %v5652_v2 }
  0x26   :  { %4644 = vmatprep.mubr.msk.f32.mxu0 %vm166_vm0, %v5657_v3 }
  0x27   :  { %16 = vsyncpa [#allocation4], 0  ;;  %v5671_v5 = vld [vmem:[%s6584_s1 + $0x40] sm:$0xff]  ;;  %v5680_v6 = vld [vmem:[%s6584_s1 + $0x48] sm:$0xff]  ;;  %vm811_vm1 = vcmask 64512   ;;  %vm2500_vm2 = vcmask 261120  }
  0x28   :  { %v5685_v7 = vld [vmem:[%s6584_s1 + $0x50] sm:$0xff]  ;;  %v5694_v8 = vld [vmem:[%s6584_s1 + $0x58] sm:$0xff]  ;;  %v5699_v9 = vld [vmem:[%s6584_s1 + $0x60] sm:$0xff]  ;;  %vm5461_vm3 = vmmov 0   ;;  %s5464_s12 = smov [#allocation3]   ;;  %vm3894_vm4 = vcmask 8192  }
  0x29   :  { %4645 = vmatmul.mubr.msk.f32.gmra.mrb[6].mxu0 %vm166_vm0, %v5666_v4  ;;  %v5708_v10 = vld [vmem:[%s6584_s1 + $0x68] sm:$0xff]  ;;  %v5713_v11 = vld [vmem:[%s6584_s1 + $0x70] sm:$0xff]  ;;  %v5722_v12 = vld [vmem:[%s6584_s1 + $0x78] sm:$0xff] }
  0x2a   :  { %4647 = vmatprep.mubr.msk.f32.mxu0 %vm166_vm0, %v5671_v5  ;;  %v5727_v13 = vld [vmem:[%s6584_s1 + $0x80] sm:$0xff]  ;;  %v5736_v14 = vld [vmem:[%s6584_s1 + $0x88] sm:$0xff]  ;;  %v5741_v15 = vld [vmem:[%s6584_s1 + $0x90] sm:$0xff] }
  0x2b   :  { %v5750_v16 = vld [vmem:[%s6584_s1 + $0x98] sm:$0xff]  ;;  %v5755_v17 = vld [vmem:[%s6584_s1 + $0xa0] sm:$0xff]  ;;  %v5764_v18 = vld [vmem:[%s6584_s1 + $0xa8] sm:$0xff] }
  0x2c   :  { %v5769_v19 = vld [vmem:[%s6584_s1 + $0xb0] sm:$0xff]  ;;  %v5778_v20 = vld [vmem:[%s6584_s1 + $0xb8] sm:$0xff]  ;;  %v5783_v21 = vld [vmem:[%s6584_s1 + $0xc0] sm:$0xff] }
  0x2d   :  { %4648 = vmatmul.mubr.msk.f32.gmra.mrb[8].mxu0 %vm166_vm0, %v5680_v6  ;;  %v5792_v22 = vld [vmem:[%s6584_s1 + $0xc8] sm:$0xff]  ;;  %v5797_v23 = vld [vmem:[%s6584_s1 + $0xd0] sm:$0xff]  ;;  %v5806_v24 = vld [vmem:[%s6584_s1 + $0xd8] sm:$0xff] }
  0x2e   :  { %4650 = vmatprep.mubr.msk.f32.mxu0 %vm166_vm0, %v5685_v7  ;;  %v5811_v25 = vld [vmem:[%s6584_s1 + $0xe0] sm:$0xff]  ;;  %v5820_v26 = vld [vmem:[%s6584_s1 + $0xe8] sm:$0xff]  ;;  %v5825_v27 = vld [vmem:[%s6584_s1 + $0xf0] sm:$0xff] }
  0x2f   :  { %v5834_v28 = vld [vmem:[%s6584_s1 + $0xf8] sm:$0xff]  ;;  %v5839_v29 = vld [vmem:[%s6584_s1 + $0x100] sm:$0xff]  ;;  %v5848_v30 = vld [vmem:[%s6584_s1 + $0x108] sm:$0xff] }
  0x30   :  { %v5853_v31 = vld [vmem:[%s6584_s1 + $0x110] sm:$0xff]  ;;  %v5862_v32 = vld [vmem:[%s6584_s1 + $0x118] sm:$0xff]  ;;  %v5867_v33 = vld [vmem:[%s6584_s1 + $0x120] sm:$0xff] }
  0x31   :  { %4651 = vmatmul.mubr.msk.f32.gmra.mrb[10].mxu0 %vm166_vm0, %v5694_v8  ;;  %v5876_v34 = vld [vmem:[%s6584_s1 + $0x128] sm:$0xff]  ;;  %v5881_v35 = vld [vmem:[%s6584_s1 + $0x130] sm:$0xff]  ;;  %v5890_v36 = vld [vmem:[%s6584_s1 + $0x138] sm:$0xff] }
  0x32   :  { %4653 = vmatprep.mubr.msk.f32.mxu0 %vm166_vm0, %v5699_v9  ;;  %v5895_v37 = vld [vmem:[%s6584_s1 + $0x140] sm:$0xff]  ;;  %v5904_v38 = vld [vmem:[%s6584_s1 + $0x148] sm:$0xff]  ;;  %v5909_v39 = vld [vmem:[%s6584_s1 + $0x150] sm:$0xff] }
  0x33   :  { %v5918_v40 = vld [vmem:[%s6584_s1 + $0x158] sm:$0xff]  ;;  %v5923_v41 = vld [vmem:[%s6584_s1 + $0x160] sm:$0xff]  ;;  %v5932_v42 = vld [vmem:[%s6584_s1 + $0x168] sm:$0xff] }
  0x34   :  { %6622 = vst [vmem:[#allocation6_spill] sm:$0xff] %v5918_v40  ;;  %6623 = vst [vmem:[#allocation7_spill] sm:$0xff] %v5923_v41  ;;  %v5937_v43 = vld [vmem:[%s6584_s1 + $0x170] sm:$0xff]  ;;  %v5946_v44 = vld [vmem:[%s6584_s1 + $0x178] sm:$0xff] }
  0x35   :  { %4654 = vmatmul.mubr.msk.f32.gmra.mrb[12].mxu0 %vm166_vm0, %v5708_v10  ;;  %6624 = vst [vmem:[#allocation8_spill] sm:$0xff] %v5932_v42  ;;  %6625 = vst [vmem:[#allocation9_spill] sm:$0xff] %v5937_v43  ;;  %v5951_v45 = vld [vmem:[%s6584_s1 + $0x180] sm:$0xff]  ;;  %v5960_v46 = vld [vmem:[%s6584_s1 + $0x188] sm:$0xff] }
  0x36   :  { %4656 = vmatprep.mubr.msk.f32.mxu0 %vm166_vm0, %v5713_v11  ;;  %6626 = vst [vmem:[#allocation10_spill] sm:$0xff] %v5946_v44  ;;  %6627 = vst [vmem:[#allocation11_spill] sm:$0xff] %v5951_v45  ;;  %v5965_v47 = vld [vmem:[%s6584_s1 + $0x190] sm:$0xff]  ;;  %v5974_v48 = vld [vmem:[%s6584_s1 + $0x198] sm:$0xff] }
  0x37   :  { %6628 = vst [vmem:[#allocation12_spill] sm:$0xff] %v5960_v46  ;;  %6629 = vst [vmem:[#allocation13_spill] sm:$0xff] %v5965_v47  ;;  %v5979_v49 = vld [vmem:[%s6584_s1 + $0x1a0] sm:$0xff]  ;;  %v4006_v50 = vld [vmem:[%s6585_s2 + $0x8] sm:$0xff] }
  0x38   :  { %6630 = vst [vmem:[#allocation14_spill] sm:$0xff] %v5974_v48  ;;  %6631 = vst [vmem:[#allocation15_spill] sm:$0xff] %v5979_v49  ;;  %4743 = vmatprep.subr.mxu1 %v4006_v50  ;;  %v5991_v51 = vld [vmem:[%s6584_s1 + $0x1a8] sm:$0xff]  ;;  %v5996_v52 = vld [vmem:[%s6584_s1 + $0x1b0] sm:$0xff] }
  0x39   :  { %4657 = vmatmul.mubr.msk.f32.gmra.mrb[14].mxu0 %vm166_vm0, %v5722_v12  ;;  %6632 = vst [vmem:[#allocation16_spill] sm:$0xff] %v5991_v51  ;;  %4744 = vmatpush3.msra.mxu1 %v4006_v50  ;;  %6633 = vst [vmem:[#allocation17_spill] sm:$0xff] %v5996_v52  ;;  %v808_v53 = vld [vmem:[%s6585_s2] sm:$0xff]  ;;  %v6008_v54 = vld [vmem:[%s6584_s1 + $0x1b8] sm:$0xff] }
  0x3a   :  { %4659 = vmatprep.mubr.msk.f32.mxu0 %vm166_vm0, %v5727_v13  ;;  %4757 = vmatprep.subr.mxu1 %v808_v53  ;;  %6634 = vst [vmem:[#allocation18_spill] sm:$0xff] %v6008_v54  ;;  %v6013_v56 = vld [vmem:[%s6584_s1 + $0x1c0] sm:$0xff]  ;;  %v6022_v57 = vld [vmem:[%s6584_s1 + $0x1c8] sm:$0xff]  ;;  %v6027_v58 = vld [vmem:[%s6584_s1 + $0x1d0] sm:$0xff] }
  0x3b   :  { %6635 = vst [vmem:[#allocation19_spill] sm:$0xff] %v6013_v56  ;;  %6636 = vst [vmem:[#allocation20_spill] sm:$0xff] %v6022_v57  ;;  %v6036_v59 = vld [vmem:[%s6584_s1 + $0x1d8] sm:$0xff]  ;;  %v6041_v60 = vld [vmem:[%s6584_s1 + $0x1e0] sm:$0xff] }
  0x3c   :  { %6637 = vst [vmem:[#allocation21_spill] sm:$0xff] %v6027_v58  ;;  %6638 = vst [vmem:[#allocation22_spill] sm:$0xff] %v6036_v59  ;;  %v6050_v61 = vld [vmem:[%s6584_s1 + $0x1e8] sm:$0xff]  ;;  %v6055_v50 = vld [vmem:[%s6584_s1 + $0x1f0] sm:$0xff] }
  0x3d   :  { %4660 = vmatmul.mubr.msk.f32.gmra.mrb[16].mxu0 %vm166_vm0, %v5736_v14  ;;  %6639 = vst [vmem:[#allocation23_spill] sm:$0xff] %v6041_v60  ;;  %6640 = vst [vmem:[#allocation24_spill] sm:$0xff] %v6050_v61 }
  0x3e   :  { %4662 = vmatprep.mubr.msk.f32.mxu0 %vm166_vm0, %v5741_v15  ;;  %6641 = vst [vmem:[#allocation25_spill] sm:$0xff] %v6055_v50 }
  0x41   :  { %4663 = vmatmul.mubr.msk.f32.gmra.mrb[18].mxu0 %vm166_vm0, %v5750_v16 }
  0x42   :  { %4665 = vmatprep.mubr.msk.f32.mxu0 %vm166_vm0, %v5755_v17 }
  0x45   :  { %4666 = vmatmul.mubr.msk.f32.gmra.mrb[20].mxu0 %vm166_vm0, %v5764_v18 }
  0x46   :  { %4668 = vmatprep.mubr.msk.f32.mxu0 %vm166_vm0, %v5769_v19 }
  0x49   :  { %4669 = vmatmul.mubr.msk.f32.gmra.mrb[22].mxu0 %vm166_vm0, %v5778_v20 }
  0x4a   :  { %4671 = vmatprep.mubr.msk.f32.mxu0 %vm166_vm0, %v5783_v21 }
  0x4d   :  { %4672 = vmatmul.mubr.msk.f32.gmra.mrb[24].mxu0 %vm166_vm0, %v5792_v22 }
  0x4e   :  { %4674 = vmatprep.mubr.msk.f32.mxu0 %vm166_vm0, %v5797_v23 }
  0x51   :  { %4675 = vmatmul.mubr.msk.f32.gmra.mrb[26].mxu0 %vm166_vm0, %v5806_v24 }
  0x52   :  { %4677 = vmatprep.mubr.msk.f32.mxu0 %vm166_vm0, %v5811_v25 }
  0x55   :  { %4678 = vmatmul.mubr.msk.f32.gmra.mrb[28].mxu0 %vm166_vm0, %v5820_v26 }
  0x56   :  { %4680 = vmatprep.mubr.msk.f32.mxu0 %vm166_vm0, %v5825_v27 }
  0x59   :  { %4681 = vmatmul.mubr.msk.f32.gmra.mrb[30].mxu0 %vm166_vm0, %v5834_v28 }
  0x5a   :  { %4683 = vmatprep.mubr.msk.f32.mxu0 %vm166_vm0, %v5839_v29 }
  0x5d   :  { %4684 = vmatmul.mubr.msk.f32.gmra.mrb[32].mxu0 %vm166_vm0, %v5848_v30 }
  0x5e   :  { %4686 = vmatprep.mubr.msk.f32.mxu0 %vm166_vm0, %v5853_v31 }
  0x61   :  { %4687 = vmatmul.mubr.msk.f32.gmra.mrb[34].mxu0 %vm166_vm0, %v5862_v32 }
  0x62   :  { %4689 = vmatprep.mubr.msk.f32.mxu0 %vm166_vm0, %v5867_v33 }
  0x65   :  { %4690 = vmatmul.mubr.msk.f32.gmra.mrb[36].mxu0 %vm166_vm0, %v5876_v34 }
  0x66   :  { %4692 = vmatprep.mubr.msk.f32.mxu0 %vm166_vm0, %v5881_v35 }
  0x69   :  { %4693 = vmatmul.mubr.msk.f32.gmra.mrb[38].mxu0 %vm166_vm0, %v5890_v36 }
  0x6a   :  { %4695 = vmatprep.mubr.msk.f32.mxu0 %vm166_vm0, %v5895_v37 }
  0x6d   :  { %4696 = vmatmul.mubr.msk.f32.gmra.mrb[40].mxu0 %vm166_vm0, %v5904_v38 }
  0x6e   :  { %4698 = vmatprep.mubr.msk.f32.mxu0 %vm166_vm0, %v5909_v39 }
  0x71   :  { %4699 = vmatmul.mubr.msk.f32.gmra.mrb[42].mxu0 %vm166_vm0, %v5918_v40 }
  0x72   :  { %4701 = vmatprep.mubr.msk.f32.mxu0 %vm166_vm0, %v5923_v41 }
  0x75   :  { %4702 = vmatmul.mubr.msk.f32.gmra.mrb[44].mxu0 %vm166_vm0, %v5932_v42 }
  0x76   :  { %4704 = vmatprep.mubr.msk.f32.mxu0 %vm166_vm0, %v5937_v43 }
  0x79   :  { %4705 = vmatmul.mubr.msk.f32.gmra.mrb[46].mxu0 %vm166_vm0, %v5946_v44 }
  0x7a   :  { %4707 = vmatprep.mubr.msk.f32.mxu0 %vm166_vm0, %v5951_v45 }
  0x7d   :  { %4708 = vmatmul.mubr.msk.f32.gmra.mrb[48].mxu0 %vm166_vm0, %v5960_v46 }
  0x7e   :  { %4710 = vmatprep.mubr.msk.f32.mxu0 %vm166_vm0, %v5965_v47 }
  0x81   :  { %4711 = vmatmul.mubr.msk.f32.gmra.mrb[50].mxu0 %vm166_vm0, %v5974_v48 }
  0x82   :  { %4713 = vmatprep.mubr.msk.f32.mxu0 %vm166_vm0, %v5979_v49 }
  0x85   :  { %4714 = vmatmul.mubr.msk.f32.gmra.mrb[52].mxu0 %vm166_vm0, %v5991_v51 }
  0x86   :  { %4716 = vmatprep.mubr.msk.f32.mxu0 %vm166_vm0, %v5996_v52 }
  0x89   :  { %4717 = vmatmul.mubr.msk.f32.gmra.mrb[54].mxu0 %vm166_vm0, %v6008_v54 }
  0x8a   :  { %4719 = vmatprep.mubr.msk.f32.mxu0 %vm166_vm0, %v6013_v56 }
  0x8d   :  { %4720 = vmatmul.mubr.msk.f32.gmra.mrb[56].mxu0 %vm166_vm0, %v6022_v57 }
  0x8e   :  { %4722 = vmatprep.mubr.msk.f32.mxu0 %vm166_vm0, %v6027_v58 }
  0x91   :  { %4723 = vmatmul.mubr.msk.f32.gmra.mrb[58].mxu0 %vm166_vm0, %v6036_v59  ;;  %v6069_v59 = vld [vmem:[%s6584_s1 + $0x200] sm:$0xff] }
  0x92   :  { %4725 = vmatprep.mubr.msk.f32.mxu0 %vm166_vm0, %v6041_v60  ;;  %v6064_v60 = vld [vmem:[%s6584_s1 + $0x1f8] sm:$0xff]  ;;  %6643 = vst [vmem:[#allocation27_spill] sm:$0xff] %v6069_v59 }
  0x93   :  { %6642 = vst [vmem:[#allocation26_spill] sm:$0xff] %v6064_v60 }
  0x95   :  { %4726 = vmatmul.mubr.msk.f32.gmra.mrb[60].mxu0 %vm166_vm0, %v6050_v61  ;;  %v6083_v61 = vld [vmem:[%s6584_s1 + $0x210] sm:$0xff] }
  0x96   :  { %4728 = vmatprep.mubr.msk.f32.mxu0 %vm166_vm0, %v6055_v50  ;;  %v6078_v50 = vld [vmem:[%s6584_s1 + $0x208] sm:$0xff]  ;;  %6645 = vst [vmem:[#allocation29_spill] sm:$0xff] %v6083_v61 }
  0x97   :  { %6644 = vst [vmem:[#allocation28_spill] sm:$0xff] %v6078_v50 }
  0x99   :  { %4729 = vmatmul.mubr.msk.f32.gmra.mrb[62].mxu0 %vm166_vm0, %v6064_v60  ;;  %v6097_v60 = vld [vmem:[%s6584_s1 + $0x220] sm:$0xff] }
  0x9a   :  { %4731 = vmatprep.mubr.msk.f32.mxu0 %vm166_vm0, %v6069_v59  ;;  %v6092_v59 = vld [vmem:[%s6584_s1 + $0x218] sm:$0xff]  ;;  %6647 = vst [vmem:[#allocation31_spill] sm:$0xff] %v6097_v60 }
  0x9b   :  { %6646 = vst [vmem:[#allocation30_spill] sm:$0xff] %v6092_v59 }
  0x9d   :  { %4732 = vmatmul.mubr.msk.f32.gmra.mrb[64].mxu0 %vm166_vm0, %v6078_v50  ;;  %v6111_v50 = vld [vmem:[%s6584_s1 + $0x230] sm:$0xff] }
  0x9e   :  { %4734 = vmatprep.mubr.msk.f32.mxu0 %vm166_vm0, %v6083_v61  ;;  %v6106_v61 = vld [vmem:[%s6584_s1 + $0x228] sm:$0xff]  ;;  %6649 = vst [vmem:[#allocation33_spill] sm:$0xff] %v6111_v50 }
  0x9f   :  { %6648 = vst [vmem:[#allocation32_spill] sm:$0xff] %v6106_v61 }
  0xa1   :  { %4735 = vmatmul.mubr.msk.f32.gmra.mrb[66].mxu0 %vm166_vm0, %v6092_v59 }
  0xa2   :  { %4737 = vmatprep.mubr.msk.f32.mxu0 %vm166_vm0, %v6097_v60  ;;  %v6120_v60 = vld [vmem:[%s6584_s1 + $0x238] sm:$0xff] }
  0xa3   :  { %6650 = vst [vmem:[#allocation34_spill] sm:$0xff] %v6120_v60 }
  0xa5   :  { %4738 = vmatmul.mubr.msk.f32.gmra.mrb[68].mxu0 %vm166_vm0, %v6106_v61 }
  0xa6   :  { %4740 = vmatprep.mubr.msk.f32.mxu0 %vm166_vm0, %v6111_v50  ;;  %v4023_v50 = vld [vmem:[%s6585_s2 + $0x10] sm:$0xff] }
  0xa9   :  { %4741 = vmatmul.mubr.msk.f32.gmra.mrb[70].mxu0 %vm166_vm0, %v6120_v60 }
  0xf0   :  { %v4637_v59 = vpop.f32.mrb[0].mxu0 }
  0xf1   :  { %v449_v58 = vpop.f32.mrb[1].mxu0 }
  0xf4   :  { %v4640_v57 = vpop.f32.mrb[2].mxu0 }
  0xf5   :  { %v459_v56 = vpop.f32.mrb[3].mxu0 }
  0xf8   :  { %v4643_v54 = vpop.f32.mrb[4].mxu0 }
  0xf9   :  { %v469_v52 = vpop.f32.mrb[5].mxu0 }
  0xfc   :  { %v4646_v51 = vpop.f32.mrb[6].mxu0 }
  0xfd   :  { %v479_v49 = vpop.f32.mrb[7].mxu0 }
 0x100   :  { %v4649_v61 = vpop.f32.mrb[8].mxu0 }
 0x101   :  { %v489_v48 = vpop.f32.mrb[9].mxu0 }
 0x102   :  { %4745 = vmatprep.mubr.msk.f32.mxu1 %vm811_vm1, %v489_v48 }
 0x103   :  { %4746 = vmatmul.mubr.msk.f32.vlgmr.msra.gmra.mrb[0].mxu1 %vm811_vm1, %v4649_v61 }
 0x104   :  { %v4652_v60 = vpop.f32.mrb[10].mxu0  ;;  %4758 = vmatpush3.msra.mxu1 %v808_v53 }
 0x105   :  { %v499_v47 = vpop.f32.mrb[11].mxu0  ;;  %4771 = vmatprep.subr.mxu1 %v4023_v50 }
 0x106   :  { %4748 = vmatprep.mubr.msk.f32.mxu1 %vm811_vm1, %v499_v47  ;;  %v4032_v47 = vld [vmem:[%s6585_s2 + $0x18] sm:$0xff] }
 0x107   :  { %4749 = vmatmul.mubr.msk.f32.gmra.mrb[2].mxu1 %vm811_vm1, %v4652_v60 }
 0x108   :  { %v4655_v46 = vpop.f32.mrb[12].mxu0 }
 0x109   :  { %v509_v45 = vpop.f32.mrb[13].mxu0 }
 0x10a   :  { %4751 = vmatprep.mubr.msk.f32.mxu1 %vm811_vm1, %v509_v45 }
 0x10b   :  { %4752 = vmatmul.mubr.msk.f32.gmra.mrb[4].mxu1 %vm811_vm1, %v4655_v46 }
 0x10c   :  { %v4658_v48 = vpop.f32.mrb[14].mxu0 }
 0x10d   :  { %v519_v44 = vpop.f32.mrb[15].mxu0 }
 0x10e   :  { %4754 = vmatprep.mubr.msk.f32.mxu1 %vm811_vm1, %v519_v44 }
 0x10f   :  { %4755 = vmatmul.mubr.msk.f32.gmra.mrb[6].mxu1 %vm811_vm1, %v4658_v48 }
 0x110   :  { %4759 = vmatprep.mubr.msk.f32.mxu1 %vm811_vm1, %v449_v58  ;;  %v4661_v53 = vpop.f32.mrb[16].mxu0 }
 0x111   :  { %v529_v61 = vpop.f32.mrb[17].mxu0 }
 0x113   :  { %4760 = vmatmul.mubr.msk.f32.vlgmr.msra.gmra.mrb[0].mxu1 %vm811_vm1, %v4637_v59 }
 0x114   :  { %4762 = vmatprep.mubr.msk.f32.mxu1 %vm811_vm1, %v459_v56  ;;  %4772 = vmatpush3.msra.mxu1 %v4023_v50  ;;  %v4664_v45 = vpop.f32.mrb[18].mxu0 }
 0x115   :  { %4785 = vmatprep.subr.mxu1 %v4032_v47  ;;  %v539_v46 = vpop.f32.mrb[19].mxu0 }
 0x117   :  { %4763 = vmatmul.mubr.msk.f32.gmra.mrb[2].mxu1 %vm811_vm1, %v4640_v57  ;;  %v4041_v57 = vld [vmem:[%s6585_s2 + $0x20] sm:$0xff] }
 0x118   :  { %4765 = vmatprep.mubr.msk.f32.mxu1 %vm811_vm1, %v469_v52  ;;  %v4667_v44 = vpop.f32.mrb[20].mxu0 }
 0x119   :  { %v549_v58 = vpop.f32.mrb[21].mxu0 }
 0x11b   :  { %4766 = vmatmul.mubr.msk.f32.gmra.mrb[4].mxu1 %vm811_vm1, %v4643_v54 }
 0x11c   :  { %4768 = vmatprep.mubr.msk.f32.mxu1 %vm811_vm1, %v479_v49  ;;  %v4670_v60 = vpop.f32.mrb[22].mxu0 }
 0x11d   :  { %v559_v48 = vpop.f32.mrb[23].mxu0 }
 0x11f   :  { %4769 = vmatmul.mubr.msk.f32.gmra.mrb[6].mxu1 %vm811_vm1, %v4646_v51 }
 0x120   :  { %4773 = vmatprep.mubr.msk.f32.mxu1 %vm811_vm1, %v529_v61  ;;  %v4673_v56 = vpop.f32.mrb[24].mxu0 }
 0x121   :  { %v569_v59 = vpop.f32.mrb[25].mxu0 }
 0x123   :  { %4774 = vmatmul.mubr.msk.f32.vlgmr.msra.gmra.mrb[0].mxu1 %vm811_vm1, %v4661_v53 }
 0x124   :  { %4786 = vmatpush3.msra.mxu1 %v4032_v47  ;;  %4776 = vmatprep.mubr.msk.f32.mxu1 %vm811_vm1, %v539_v46  ;;  %v4676_v52 = vpop.f32.mrb[26].mxu0 }
 0x125   :  { %4799 = vmatprep.subr.mxu1 %v4041_v57  ;;  %v579_v49 = vpop.f32.mrb[27].mxu0 }
 0x127   :  { %4777 = vmatmul.mubr.msk.f32.gmra.mrb[2].mxu1 %vm811_vm1, %v4664_v45  ;;  %v4050_v45 = vld [vmem:[%s6585_s2 + $0x28] sm:$0xff] }
 0x128   :  { %4779 = vmatprep.mubr.msk.f32.mxu1 %vm811_vm1, %v549_v58  ;;  %v4679_v51 = vpop.f32.mrb[28].mxu0 }
 0x129   :  { %v589_v54 = vpop.f32.mrb[29].mxu0 }
 0x12b   :  { %4780 = vmatmul.mubr.msk.f32.gmra.mrb[4].mxu1 %vm811_vm1, %v4667_v44 }
 0x12c   :  { %4782 = vmatprep.mubr.msk.f32.mxu1 %vm811_vm1, %v559_v48  ;;  %v4682_v50 = vpop.f32.mrb[30].mxu0 }
 0x12d   :  { %v599_v61 = vpop.f32.mrb[31].mxu0 }
 0x12f   :  { %4783 = vmatmul.mubr.msk.f32.gmra.mrb[6].mxu1 %vm811_vm1, %v4670_v60 }
 0x130   :  { %4787 = vmatprep.mubr.msk.f32.mxu1 %vm811_vm1, %v569_v59  ;;  %v4685_v53 = vpop.f32.mrb[32].mxu0 }
 0x131   :  { %v609_v47 = vpop.f32.mrb[33].mxu0 }
 0x133   :  { %4788 = vmatmul.mubr.msk.f32.vlgmr.msra.gmra.mrb[0].mxu1 %vm811_vm1, %v4673_v56 }
 0x134   :  { %4800 = vmatpush3.msra.mxu1 %v4041_v57  ;;  %4790 = vmatprep.mubr.msk.f32.mxu1 %vm811_vm1, %v579_v49  ;;  %v4688_v46 = vpop.f32.mrb[34].mxu0 }
 0x135   :  { %4813 = vmatprep.subr.mxu1 %v4050_v45  ;;  %v619_v44 = vpop.f32.mrb[35].mxu0 }
 0x137   :  { %4791 = vmatmul.mubr.msk.f32.gmra.mrb[2].mxu1 %vm811_vm1, %v4676_v52  ;;  %v4059_v52 = vld [vmem:[%s6585_s2 + $0x30] sm:$0xff] }
 0x138   :  { %4793 = vmatprep.mubr.msk.f32.mxu1 %vm811_vm1, %v589_v54  ;;  %v4691_v58 = vpop.f32.mrb[36].mxu0 }
 0x139   :  { %v629_v60 = vpop.f32.mrb[37].mxu0 }
 0x13b   :  { %4794 = vmatmul.mubr.msk.f32.gmra.mrb[4].mxu1 %vm811_vm1, %v4679_v51 }
 0x13c   :  { %4796 = vmatprep.mubr.msk.f32.mxu1 %vm811_vm1, %v599_v61  ;;  %v4694_v48 = vpop.f32.mrb[38].mxu0 }
 0x13d   :  { %v639_v59 = vpop.f32.mrb[39].mxu0 }
 0x13f   :  { %4797 = vmatmul.mubr.msk.f32.gmra.mrb[6].mxu1 %vm811_vm1, %v4682_v50 }
 0x140   :  { %4801 = vmatprep.mubr.msk.f32.mxu1 %vm811_vm1, %v609_v47  ;;  %v4697_v56 = vpop.f32.mrb[40].mxu0 }
 0x141   :  { %v649_v57 = vpop.f32.mrb[41].mxu0 }
 0x143   :  { %4802 = vmatmul.mubr.msk.f32.vlgmr.msra.gmra.mrb[0].mxu1 %vm811_vm1, %v4685_v53 }
 0x144   :  { %4814 = vmatpush3.msra.mxu1 %v4050_v45  ;;  %4804 = vmatprep.mubr.msk.f32.mxu1 %vm811_vm1, %v619_v44  ;;  %v4700_v49 = vpop.f32.mrb[42].mxu0 }
 0x145   :  { %4827 = vmatprep.subr.mxu1 %v4059_v52  ;;  %v659_v51 = vpop.f32.mrb[43].mxu0 }
 0x147   :  { %4805 = vmatmul.mubr.msk.f32.gmra.mrb[2].mxu1 %vm811_vm1, %v4688_v46  ;;  %v4068_v46 = vld [vmem:[%s6585_s2 + $0x38] sm:$0xff] }
 0x148   :  { %4807 = vmatprep.mubr.msk.f32.mxu1 %vm811_vm1, %v629_v60  ;;  %v4703_v54 = vpop.f32.mrb[44].mxu0 }
 0x149   :  { %v669_v50 = vpop.f32.mrb[45].mxu0 }
 0x14b   :  { %4808 = vmatmul.mubr.msk.f32.gmra.mrb[4].mxu1 %vm811_vm1, %v4691_v58 }
 0x14c   :  { %4810 = vmatprep.mubr.msk.f32.mxu1 %vm811_vm1, %v639_v59  ;;  %v4706_v61 = vpop.f32.mrb[46].mxu0 }
 0x14d   :  { %v679_v47 = vpop.f32.mrb[47].mxu0 }
 0x14f   :  { %4811 = vmatmul.mubr.msk.f32.gmra.mrb[6].mxu1 %vm811_vm1, %v4694_v48 }
 0x150   :  { %4815 = vmatprep.mubr.msk.f32.mxu1 %vm811_vm1, %v649_v57  ;;  %v4709_v53 = vpop.f32.mrb[48].mxu0 }
 0x151   :  { %v689_v45 = vpop.f32.mrb[49].mxu0 }
 0x153   :  { %4816 = vmatmul.mubr.msk.f32.vlgmr.msra.gmra.mrb[0].mxu1 %vm811_vm1, %v4697_v56 }
 0x154   :  { %4828 = vmatpush3.msra.mxu1 %v4059_v52  ;;  %4818 = vmatprep.mubr.msk.f32.mxu1 %vm811_vm1, %v659_v51  ;;  %v4712_v44 = vpop.f32.mrb[50].mxu0 }
 0x155   :  { %4841 = vmatprep.subr.mxu1 %v4068_v46  ;;  %v699_v58 = vpop.f32.mrb[51].mxu0 }
 0x157   :  { %4819 = vmatmul.mubr.msk.f32.gmra.mrb[2].mxu1 %vm811_vm1, %v4700_v49  ;;  %v4077_v49 = vld [vmem:[%s6585_s2 + $0x40] sm:$0xff] }
 0x158   :  { %4821 = vmatprep.mubr.msk.f32.mxu1 %vm811_vm1, %v669_v50  ;;  %v4715_v60 = vpop.f32.mrb[52].mxu0 }
 0x159   :  { %v709_v48 = vpop.f32.mrb[53].mxu0 }
 0x15b   :  { %4822 = vmatmul.mubr.msk.f32.gmra.mrb[4].mxu1 %vm811_vm1, %v4703_v54 }
 0x15c   :  { %4824 = vmatprep.mubr.msk.f32.mxu1 %vm811_vm1, %v679_v47  ;;  %v4718_v59 = vpop.f32.mrb[54].mxu0 }
 0x15d   :  { %v719_v57 = vpop.f32.mrb[55].mxu0 }
 0x15f   :  { %4825 = vmatmul.mubr.msk.f32.gmra.mrb[6].mxu1 %vm811_vm1, %v4706_v61 }
 0x160   :  { %4829 = vmatprep.mubr.msk.f32.mxu1 %vm811_vm1, %v689_v45  ;;  %v4721_v56 = vpop.f32.mrb[56].mxu0 }
 0x161   :  { %v729_v52 = vpop.f32.mrb[57].mxu0 }
 0x163   :  { %4830 = vmatmul.mubr.msk.f32.vlgmr.msra.gmra.mrb[0].mxu1 %vm811_vm1, %v4709_v53 }
 0x164   :  { %4842 = vmatpush3.msra.mxu1 %v4068_v46  ;;  %4832 = vmatprep.mubr.msk.f32.mxu1 %vm811_vm1, %v699_v58  ;;  %v4724_v51 = vpop.f32.mrb[58].mxu0 }
 0x165   :  { %4855 = vmatprep.subr.mxu1 %v4077_v49  ;;  %v739_v54 = vpop.f32.mrb[59].mxu0 }
 0x167   :  { %4833 = vmatmul.mubr.msk.f32.gmra.mrb[2].mxu1 %vm811_vm1, %v4712_v44 }
 0x168   :  { %4835 = vmatprep.mubr.msk.f32.mxu1 %vm811_vm1, %v709_v48  ;;  %v4727_v50 = vpop.f32.mrb[60].mxu0 }
 0x169   :  { %v749_v61 = vpop.f32.mrb[61].mxu0 }
 0x16b   :  { %4836 = vmatmul.mubr.msk.f32.gmra.mrb[4].mxu1 %vm811_vm1, %v4715_v60 }
 0x16c   :  { %4838 = vmatprep.mubr.msk.f32.mxu1 %vm811_vm1, %v719_v57  ;;  %v4730_v47 = vpop.f32.mrb[62].mxu0 }
 0x16d   :  { %v759_v45 = vpop.f32.mrb[63].mxu0 }
 0x16f   :  { %4839 = vmatmul.mubr.msk.f32.gmra.mrb[6].mxu1 %vm811_vm1, %v4718_v59 }
 0x170   :  { %4843 = vmatprep.mubr.msk.f32.mxu1 %vm811_vm1, %v729_v52  ;;  %v4733_v53 = vpop.f32.mrb[64].mxu0  ;;  %v4160_v52 = vld [vmem:[%s6587_s4 + $0x28] sm:$0xff] }
 0x171   :  { %v769_v46 = vpop.f32.mrb[65].mxu0 }
 0x173   :  { %4844 = vmatmul.mubr.msk.f32.vlgmr.msra.gmra.mrb[0].mxu1 %vm811_vm1, %v4721_v56  ;;  %v4159_v56 = vld [vmem:[%s6587_s4 + $0x20] sm:$0xff] }
 0x174   :  { %4856 = vmatpush3.msra.mxu1 %v4077_v49  ;;  %4846 = vmatprep.mubr.msk.f32.mxu1 %vm811_vm1, %v739_v54  ;;  %v4736_v44 = vpop.f32.mrb[66].mxu0  ;;  %v5216_v49 = vpack.c.bf16 %v4160_v52, %v4159_v56 }
 0x175   :  { %v779_v58 = vpop.f32.mrb[67].mxu0 }
 0x176   :  { %5217 = vmatprep.subr.bf16.mxu0 %v5216_v49 }
 0x177   :  { %4847 = vmatmul.mubr.msk.f32.gmra.mrb[2].mxu1 %vm811_vm1, %v4724_v51  ;;  %5219 = vmatpush3.bf16.msra.mxu0 %v5216_v49  ;;  %v4086_v51 = vld [vmem:[%s6586_s3] ss:$0 sm:$0xff] }
 0x178   :  { %4849 = vmatprep.mubr.msk.f32.mxu1 %vm811_vm1, %v749_v61  ;;  %v4739_v60 = vpop.f32.mrb[68].mxu0 }
 0x179   :  { %v789_v48 = vpop.f32.mrb[69].mxu0 }
 0x17b   :  { %4850 = vmatmul.mubr.msk.f32.gmra.mrb[4].mxu1 %vm811_vm1, %v4727_v50 }
 0x17c   :  { %4852 = vmatprep.mubr.msk.f32.mxu1 %vm811_vm1, %v759_v45  ;;  %v4742_v59 = vpop.f32.mrb[70].mxu0 }
 0x17d   :  { %v799_v57 = vpop.f32.mrb[71].mxu0 }
 0x17f   :  { %4853 = vmatmul.mubr.msk.f32.gmra.mrb[6].mxu1 %vm811_vm1, %v4730_v47 }
 0x180   :  { %4857 = vmatprep.mubr.msk.f32.mxu1 %vm811_vm1, %v769_v46 }
 0x183   :  { %4858 = vmatmul.mubr.msk.f32.vlgmr.msra.gmra.mrb[0].mxu1 %vm811_vm1, %v4733_v53 }
 0x184   :  { %4860 = vmatprep.mubr.msk.f32.mxu1 %vm811_vm1, %v779_v58 }
 0x187   :  { %4861 = vmatmul.mubr.msk.f32.gmra.mrb[2].mxu1 %vm811_vm1, %v4736_v44 }
 0x188   :  { %4863 = vmatprep.mubr.msk.f32.mxu1 %vm811_vm1, %v789_v48 }
 0x18b   :  { %4864 = vmatmul.mubr.msk.f32.gmra.mrb[4].mxu1 %vm811_vm1, %v4739_v60 }
 0x18c   :  { %4866 = vmatprep.mubr.msk.f32.mxu1 %vm811_vm1, %v799_v57 }
 0x18f   :  { %4867 = vmatmul.mubr.msk.f32.gmra.mrb[6].mxu1 %vm811_vm1, %v4742_v59 }
 0x190   :  { %4885 = vmatprep.mubr.msk.f32.mxu1 %vm166_vm0, %v5617_v55 }
 0x256   :  { %v4859_v54 = vpop.f32.mrb[0].mxu1 }
 0x257   :  { %v2051_v50 = vadd.f32 %v4859_v54, %v4086_v51  ;;  %v1996_v61 = vpop.f32.mrb[1].mxu1 }
 0x258   :  { %v2050_v47 = vadd.f32 %v4086_v51, %v1996_v61 }
 0x259   :  { %v2059_v55 = vmax.f32 %v2051_v50, 0.0 }
 0x25a   :  { %v2058_v45 = vmax.f32 %v2050_v47, 0.0  ;;  %v4862_v53 = vpop.f32.mrb[2].mxu1 }
 0x25b   :  { %v2053_v46 = vadd.f32 %v4862_v53, %v4086_v51  ;;  %v2006_v44 = vpop.f32.mrb[3].mxu1 }
 0x25c   :  { %v5200_v58 = vpack.c.bf16 %v2059_v55, %v2058_v45  ;;  %v2052_v60 = vadd.f32 %v4086_v51, %v2006_v44  ;;  %v4179_v44 = vld [vmem:[%s6587_s4 + $0x40] sm:$0xff] }
 0x25d   :  { %v2061_v48 = vmax.f32 %v2053_v46, 0.0 }
 0x25e   :  { %v2060_v59 = vmax.f32 %v2052_v60, 0.0  ;;  %v4865_v57 = vpop.f32.mrb[4].mxu1  ;;  %5201 = vmatprep.subr.bf16.mxu1 %v5200_v58 }
 0x25f   :  { %v2055_v56 = vadd.f32 %v4865_v57, %v4086_v51  ;;  %v2016_v52 = vpop.f32.mrb[5].mxu1  ;;  %5203 = vmatpush3.bf16.msra.mxu1 %v5200_v58  ;;  %v4180_v58 = vld [vmem:[%s6587_s4 + $0x48] sm:$0xff]  ;;  %v4181_v57 = vld [vmem:[%s6587_s4 + $0x50] sm:$0xff] }
 0x260   :  { %v5204_v43 = vpack.c.bf16 %v2061_v48, %v2060_v59  ;;  %v2054_v42 = vadd.f32 %v4086_v51, %v2016_v52  ;;  %v5232_v59 = vpack.c.bf16 %v4180_v58, %v4179_v44 }
 0x261   :  { %v2063_v41 = vmax.f32 %v2055_v56, 0.0  ;;  %v4182_v56 = vld [vmem:[%s6587_s4 + $0x58] sm:$0xff] }
 0x262   :  { %v2062_v54 = vmax.f32 %v2054_v42, 0.0  ;;  %v4868_v40 = vpop.f32.mrb[6].mxu1  ;;  %5205 = vmatprep.subr.bf16.mxu1 %v5204_v43  ;;  %v2494_v42 = vld [vmem:[%s6587_s4 + $0x18] sm:$0xff] }
 0x263   :  { %v2057_v50 = vadd.f32 %v4868_v40, %v4086_v51  ;;  %v2026_v61 = vpop.f32.mrb[7].mxu1  ;;  %5207 = vmatpush3.bf16.msra.mxu1 %v5204_v43 }
 0x264   :  { %v5208_v47 = vpack.c.bf16 %v2063_v41, %v2062_v54  ;;  %v2056_v53 = vadd.f32 %v4086_v51, %v2026_v61  ;;  %v2493_v41 = vld [vmem:[%s6587_s4 + $0x10] sm:$0xff]  ;;  %v4191_v61 = vld [vmem:[%s6587_s4 + $0x60] sm:$0xff] }
 0x265   :  { %v2065_v55 = vmax.f32 %v2057_v50, 0.0  ;;  %v5228_v51 = vpack.c.bf16 %v2494_v42, %v2493_v41  ;;  %v5236_v50 = vpack.c.bf16 %v4182_v56, %v4181_v57 }
 0x266   :  { %v2064_v45 = vmax.f32 %v2056_v53, 0.0  ;;  %5209 = vmatprep.subr.bf16.mxu1 %v5208_v47 }
 0x267   :  { %5211 = vmatpush3.bf16.msra.mxu1 %v5208_v47  ;;  %v4192_v47 = vld [vmem:[%s6587_s4 + $0x68] sm:$0xff] }
 0x268   :  { %v5212_v46 = vpack.c.bf16 %v2065_v55, %v2064_v45  ;;  %v5240_v45 = vpack.c.bf16 %v4192_v47, %v4191_v61  ;;  %v4241_v47 = vld [vmem:[%s6587_s4 + $0xf0] sm:$0xff] }
 0x26a   :  { %5213 = vmatprep.subr.bf16.mxu1 %v5212_v46 }
 0x26b   :  { %5215 = vmatpush3.bf16.msra.mxu1 %v5212_v46 }
 0x26c   :  { %5294 = vmatprep.subr.bf16.mxu1 %v5216_v49 }
 0x26e   :  { %4886 = vmatmul.mubr.msk.f32.vlgmr.msra.gmra.mrb[8].mxu1 %vm166_vm0, %v5624_v62  ;;  %v4161_v62 = vld [vmem:[%s6587_s4 + $0x30] sm:$0xff] }
 0x26f   :  { %4888 = vmatprep.mubr.msk.f32.mxu1 %vm166_vm0, %v5629_v63  ;;  %5296 = vmatpush3.bf16.msra.mxu1 %v5216_v49  ;;  %v4162_v63 = vld [vmem:[%s6587_s4 + $0x38] sm:$0xff] }
 0x272   :  { %4889 = vmatmul.mubr.msk.f32.gmra.mrb[10].mxu1 %vm166_vm0, %v5638_v0  ;;  %v5220_v0 = vpack.c.bf16 %v4162_v63, %v4161_v62 }
 0x273   :  { %4891 = vmatprep.mubr.msk.f32.mxu1 %vm166_vm0, %v5643_v1  ;;  %v6651_v1 = vld [vmem:[#allocation6_spill] sm:$0xff] }
 0x274   :  { %5221 = vmatprep.subr.bf16.mxu0 %v5220_v0  ;;  %5295 = vmatprep.subr.bf16.mxu1 %v5220_v0 }
 0x275   :  { %5223 = vmatpush3.bf16.msra.mxu0 %v5220_v0  ;;  %5297 = vmatpush3.bf16.msra.mxu1 %v5220_v0 }
 0x276   :  { %4892 = vmatmul.mubr.msk.f32.gmra.mrb[12].mxu1 %vm166_vm0, %v5652_v2  ;;  %v6652_v2 = vld [vmem:[#allocation7_spill] sm:$0xff] }
 0x277   :  { %4894 = vmatprep.mubr.msk.f32.mxu1 %vm166_vm0, %v5657_v3  ;;  %v6653_v3 = vld [vmem:[#allocation8_spill] sm:$0xff] }
 0x27a   :  { %4895 = vmatmul.mubr.msk.f32.gmra.mrb[14].mxu1 %vm166_vm0, %v5666_v4  ;;  %v6654_v4 = vld [vmem:[#allocation9_spill] sm:$0xff] }
 0x27b   :  { %4897 = vmatprep.mubr.msk.f32.mxu1 %vm166_vm0, %v5671_v5  ;;  %v6655_v5 = vld [vmem:[#allocation10_spill] sm:$0xff] }
 0x27e   :  { %4898 = vmatmul.mubr.msk.f32.gmra.mrb[16].mxu1 %vm166_vm0, %v5680_v6  ;;  %v6656_v6 = vld [vmem:[#allocation11_spill] sm:$0xff] }
 0x27f   :  { %4900 = vmatprep.mubr.msk.f32.mxu1 %vm166_vm0, %v5685_v7  ;;  %v6657_v7 = vld [vmem:[#allocation12_spill] sm:$0xff] }
 0x282   :  { %4901 = vmatmul.mubr.msk.f32.gmra.mrb[18].mxu1 %vm166_vm0, %v5694_v8  ;;  %v6658_v8 = vld [vmem:[#allocation13_spill] sm:$0xff] }
 0x283   :  { %4903 = vmatprep.mubr.msk.f32.mxu1 %vm166_vm0, %v5699_v9  ;;  %v2491_v9 = vld [vmem:[%s6587_s4] sm:$0xff] }
 0x286   :  { %4904 = vmatmul.mubr.msk.f32.gmra.mrb[20].mxu1 %vm166_vm0, %v5708_v10  ;;  %v2492_v10 = vld [vmem:[%s6587_s4 + $0x8] sm:$0xff] }
 0x287   :  { %4906 = vmatprep.mubr.msk.f32.mxu1 %vm166_vm0, %v5713_v11  ;;  %v6659_v11 = vld [vmem:[#allocation14_spill] sm:$0xff] }
 0x28a   :  { %4907 = vmatmul.mubr.msk.f32.gmra.mrb[22].mxu1 %vm166_vm0, %v5722_v12  ;;  %v5224_v12 = vpack.c.bf16 %v2492_v10, %v2491_v9 }
 0x28b   :  { %4909 = vmatprep.mubr.msk.f32.mxu1 %vm166_vm0, %v5727_v13  ;;  %v6660_v13 = vld [vmem:[#allocation15_spill] sm:$0xff] }
 0x28c   :  { %5225 = vmatprep.subr.bf16.mxu0 %v5224_v12 }
 0x28e   :  { %4910 = vmatmul.mubr.msk.f32.gmra.mrb[24].mxu1 %vm166_vm0, %v5736_v14  ;;  %v6661_v14 = vld [vmem:[#allocation16_spill] sm:$0xff] }
 0x28f   :  { %4912 = vmatprep.mubr.msk.f32.mxu1 %vm166_vm0, %v5741_v15  ;;  %v6662_v15 = vld [vmem:[#allocation17_spill] sm:$0xff] }
 0x292   :  { %4913 = vmatmul.mubr.msk.f32.gmra.mrb[26].mxu1 %vm166_vm0, %v5750_v16  ;;  %v6663_v16 = vld [vmem:[#allocation18_spill] sm:$0xff] }
 0x293   :  { %4915 = vmatprep.mubr.msk.f32.mxu1 %vm166_vm0, %v5755_v17  ;;  %v6664_v17 = vld [vmem:[#allocation19_spill] sm:$0xff] }
 0x296   :  { %4916 = vmatmul.mubr.msk.f32.gmra.mrb[28].mxu1 %vm166_vm0, %v5764_v18  ;;  %v6665_v18 = vld [vmem:[#allocation20_spill] sm:$0xff] }
 0x297   :  { %4918 = vmatprep.mubr.msk.f32.mxu1 %vm166_vm0, %v5769_v19  ;;  %v6666_v19 = vld [vmem:[#allocation21_spill] sm:$0xff] }
 0x29a   :  { %4919 = vmatmul.mubr.msk.f32.gmra.mrb[30].mxu1 %vm166_vm0, %v5778_v20  ;;  %v6667_v20 = vld [vmem:[#allocation22_spill] sm:$0xff] }
 0x29b   :  { %4921 = vmatprep.mubr.msk.f32.mxu1 %vm166_vm0, %v5783_v21  ;;  %v6668_v21 = vld [vmem:[#allocation23_spill] sm:$0xff] }
 0x29e   :  { %4922 = vmatmul.mubr.msk.f32.gmra.mrb[32].mxu1 %vm166_vm0, %v5792_v22  ;;  %v6669_v22 = vld [vmem:[#allocation24_spill] sm:$0xff] }
 0x29f   :  { %4924 = vmatprep.mubr.msk.f32.mxu1 %vm166_vm0, %v5797_v23  ;;  %v6670_v23 = vld [vmem:[#allocation25_spill] sm:$0xff] }
 0x2a2   :  { %4925 = vmatmul.mubr.msk.f32.gmra.mrb[34].mxu1 %vm166_vm0, %v5806_v24  ;;  %v6671_v24 = vld [vmem:[#allocation26_spill] sm:$0xff] }
 0x2a3   :  { %4927 = vmatprep.mubr.msk.f32.mxu1 %vm166_vm0, %v5811_v25  ;;  %v6672_v25 = vld [vmem:[#allocation27_spill] sm:$0xff] }
 0x2a6   :  { %4928 = vmatmul.mubr.msk.f32.gmra.mrb[36].mxu1 %vm166_vm0, %v5820_v26  ;;  %v6673_v26 = vld [vmem:[#allocation28_spill] sm:$0xff] }
 0x2a7   :  { %4930 = vmatprep.mubr.msk.f32.mxu1 %vm166_vm0, %v5825_v27  ;;  %v6674_v27 = vld [vmem:[#allocation29_spill] sm:$0xff] }
 0x2aa   :  { %4931 = vmatmul.mubr.msk.f32.gmra.mrb[38].mxu1 %vm166_vm0, %v5834_v28  ;;  %v6675_v28 = vld [vmem:[#allocation30_spill] sm:$0xff] }
 0x2ab   :  { %4933 = vmatprep.mubr.msk.f32.mxu1 %vm166_vm0, %v5839_v29  ;;  %v6676_v29 = vld [vmem:[#allocation31_spill] sm:$0xff] }
 0x2ae   :  { %4934 = vmatmul.mubr.msk.f32.gmra.mrb[40].mxu1 %vm166_vm0, %v5848_v30  ;;  %v6677_v30 = vld [vmem:[#allocation32_spill] sm:$0xff] }
 0x2af   :  { %4936 = vmatprep.mubr.msk.f32.mxu1 %vm166_vm0, %v5853_v31  ;;  %v6678_v31 = vld [vmem:[#allocation33_spill] sm:$0xff] }
 0x2b2   :  { %4937 = vmatmul.mubr.msk.f32.gmra.mrb[42].mxu1 %vm166_vm0, %v5862_v32  ;;  %v6679_v32 = vld [vmem:[#allocation34_spill] sm:$0xff] }
 0x2b3   :  { %4939 = vmatprep.mubr.msk.f32.mxu1 %vm166_vm0, %v5867_v33 }
 0x2b6   :  { %4940 = vmatmul.mubr.msk.f32.gmra.mrb[44].mxu1 %vm166_vm0, %v5876_v34 }
 0x2b7   :  { %4942 = vmatprep.mubr.msk.f32.mxu1 %vm166_vm0, %v5881_v35 }
 0x2ba   :  { %4943 = vmatmul.mubr.msk.f32.gmra.mrb[46].mxu1 %vm166_vm0, %v5890_v36 }
 0x2bb   :  { %4945 = vmatprep.mubr.msk.f32.mxu1 %vm166_vm0, %v5895_v37 }
 0x2be   :  { %4946 = vmatmul.mubr.msk.f32.gmra.mrb[48].mxu1 %vm166_vm0, %v5904_v38 }
 0x2bf   :  { %4948 = vmatprep.mubr.msk.f32.mxu1 %vm166_vm0, %v5909_v39 }
 0x2c2   :  { %4949 = vmatmul.mubr.msk.f32.gmra.mrb[50].mxu1 %vm166_vm0, %v6651_v1  ;;  %v4193_v1 = vld [vmem:[%s6587_s4 + $0x70] sm:$0xff] }
 0x2c3   :  { %4951 = vmatprep.mubr.msk.f32.mxu1 %vm166_vm0, %v6652_v2  ;;  %v4194_v2 = vld [vmem:[%s6587_s4 + $0x78] sm:$0xff] }
 0x2c6   :  { %4952 = vmatmul.mubr.msk.f32.gmra.mrb[52].mxu1 %vm166_vm0, %v6653_v3 }
 0x2c7   :  { %4954 = vmatprep.mubr.msk.f32.mxu1 %vm166_vm0, %v6654_v4 }
 0x2ca   :  { %4955 = vmatmul.mubr.msk.f32.gmra.mrb[54].mxu1 %vm166_vm0, %v6655_v5  ;;  %v5244_v5 = vpack.c.bf16 %v4194_v2, %v4193_v1 }
 0x2cb   :  { %4957 = vmatprep.mubr.msk.f32.mxu1 %vm166_vm0, %v6656_v6  ;;  %v4203_v6 = vld [vmem:[%s6587_s4 + $0x80] sm:$0xff] }
 0x2ce   :  { %4958 = vmatmul.mubr.msk.f32.gmra.mrb[56].mxu1 %vm166_vm0, %v6657_v7  ;;  %v4204_v7 = vld [vmem:[%s6587_s4 + $0x88] sm:$0xff] }
 0x2cf   :  { %4960 = vmatprep.mubr.msk.f32.mxu1 %vm166_vm0, %v6658_v8  ;;  %v5248_v10 = vpack.c.bf16 %v4204_v7, %v4203_v6  ;;  %v4253_v7 = vld [vmem:[%s6587_s4 + $0x110] sm:$0xff] }
 0x2d2   :  { %4961 = vmatmul.mubr.msk.f32.gmra.mrb[58].mxu1 %vm166_vm0, %v6659_v11 }
 0x2d3   :  { %4963 = vmatprep.mubr.msk.f32.mxu1 %vm166_vm0, %v6660_v13 }
 0x2d6   :  { %4964 = vmatmul.mubr.msk.f32.gmra.mrb[60].mxu1 %vm166_vm0, %v6661_v14 }
 0x2d7   :  { %4966 = vmatprep.mubr.msk.f32.mxu1 %vm166_vm0, %v6662_v15  ;;  %v4205_v15 = vld [vmem:[%s6587_s4 + $0x90] sm:$0xff] }
 0x2da   :  { %4967 = vmatmul.mubr.msk.f32.gmra.mrb[62].mxu1 %vm166_vm0, %v6663_v16  ;;  %v4206_v16 = vld [vmem:[%s6587_s4 + $0x98] sm:$0xff] }
 0x2db   :  { %4969 = vmatprep.mubr.msk.f32.mxu1 %vm166_vm0, %v6664_v17 }
 0x2de   :  { %4970 = vmatmul.mubr.msk.f32.gmra.mrb[64].mxu1 %vm166_vm0, %v6665_v18 }
 0x2df   :  { %4972 = vmatprep.mubr.msk.f32.mxu1 %vm166_vm0, %v6666_v19  ;;  %v5252_v19 = vpack.c.bf16 %v4206_v16, %v4205_v15 }
 0x2e2   :  { %4973 = vmatmul.mubr.msk.f32.gmra.mrb[66].mxu1 %vm166_vm0, %v6667_v20  ;;  %v4215_v20 = vld [vmem:[%s6587_s4 + $0xa0] sm:$0xff] }
 0x2e3   :  { %4975 = vmatprep.mubr.msk.f32.mxu1 %vm166_vm0, %v6668_v21  ;;  %v4216_v21 = vld [vmem:[%s6587_s4 + $0xa8] sm:$0xff] }
 0x2e6   :  { %4976 = vmatmul.mubr.msk.f32.gmra.mrb[68].mxu1 %vm166_vm0, %v6669_v22 }
 0x2e7   :  { %4978 = vmatprep.mubr.msk.f32.mxu1 %vm166_vm0, %v6670_v23 }
 0x2ea   :  { %4979 = vmatmul.mubr.msk.f32.gmra.mrb[70].mxu1 %vm166_vm0, %v6671_v24  ;;  %v5256_v24 = vpack.c.bf16 %v4216_v21, %v4215_v20 }
 0x2eb   :  { %4981 = vmatprep.mubr.msk.f32.mxu1 %vm166_vm0, %v6672_v25 }
 0x2ee   :  { %4982 = vmatmul.mubr.msk.f32.gmra.mrb[72].mxu1 %vm166_vm0, %v6673_v26 }
 0x2ef   :  { %4984 = vmatprep.mubr.msk.f32.mxu1 %vm166_vm0, %v6674_v27 }
 0x2f2   :  { %4985 = vmatmul.mubr.msk.f32.gmra.mrb[74].mxu1 %vm166_vm0, %v6675_v28 }
 0x2f3   :  { %4987 = vmatprep.mubr.msk.f32.mxu1 %vm166_vm0, %v6676_v29  ;;  %v4217_v29 = vld [vmem:[%s6587_s4 + $0xb0] sm:$0xff] }
 0x2f6   :  { %4988 = vmatmul.mubr.msk.f32.gmra.mrb[76].mxu1 %vm166_vm0, %v6677_v30  ;;  %v4218_v30 = vld [vmem:[%s6587_s4 + $0xb8] sm:$0xff] }
 0x2f7   :  { %4990 = vmatprep.mubr.msk.f32.mxu1 %vm166_vm0, %v6678_v31 }
 0x2fa   :  { %4991 = vmatmul.mubr.msk.f32.gmra.mrb[78].mxu1 %vm166_vm0, %v6679_v32 }
 0x341   :  { %v4887_v33 = vpop.f32.mrb[8].mxu1 }
 0x342   :  { %v2132_v34 = vpop.f32.mrb[9].mxu1 }
 0x345   :  { %v4890_v35 = vpop.f32.mrb[10].mxu1 }
 0x346   :  { %v2142_v36 = vpop.f32.mrb[11].mxu1 }
 0x349   :  { %v4893_v37 = vpop.f32.mrb[12].mxu1 }
 0x34a   :  { %v2152_v38 = vpop.f32.mrb[13].mxu1 }
 0x34d   :  { %v4896_v39 = vpop.f32.mrb[14].mxu1 }
 0x34e   :  { %v2162_v40 = vpop.f32.mrb[15].mxu1 }
 0x351   :  { %v4899_v43 = vpop.f32.mrb[16].mxu1 }
 0x352   :  { %v2172_v49 = vpop.f32.mrb[17].mxu1 }
 0x353   :  { %5001 = vmatprep.mubr.msk.f32.mxu0 %vm2500_vm2, %v2172_v49  ;;  %v4230_v49 = vld [vmem:[%s6587_s4 + $0xd8] sm:$0xff] }
 0x354   :  { %5002 = vmatmul.mubr.msk.f32.vlgmr.msra.gmra.mrb[72].mxu0 %vm2500_vm2, %v4899_v43  ;;  %v4229_v43 = vld [vmem:[%s6587_s4 + $0xd0] sm:$0xff] }
 0x355   :  { %v4902_v60 = vpop.f32.mrb[18].mxu1  ;;  %5227 = vmatpush3.bf16.msra.mxu0 %v5224_v12  ;;  %v5268_v58 = vpack.c.bf16 %v4230_v49, %v4229_v43 }
 0x356   :  { %v2182_v48 = vpop.f32.mrb[19].mxu1  ;;  %5229 = vmatprep.subr.bf16.mxu0 %v5228_v51 }
 0x357   :  { %5004 = vmatprep.mubr.msk.f32.mxu0 %vm2500_vm2, %v2182_v48  ;;  %v4240_v48 = vld [vmem:[%s6587_s4 + $0xe8] sm:$0xff] }
 0x358   :  { %5005 = vmatmul.mubr.msk.f32.gmra.mrb[74].mxu0 %vm2500_vm2, %v4902_v60  ;;  %v4239_v60 = vld [vmem:[%s6587_s4 + $0xe0] sm:$0xff] }
 0x359   :  { %5231 = vmatpush3.bf16.msra.mxu0 %v5228_v51  ;;  %5021 = vmatprep.mubr.msk.f32.mxu0 %vm2500_vm2, %v2132_v34  ;;  %v4905_v52 = vpop.f32.mrb[20].mxu1  ;;  %v4227_v34 = vld [vmem:[%s6587_s4 + $0xc0] sm:$0xff]  ;;  %v5272_v56 = vpack.c.bf16 %v4240_v48, %v4239_v60 }
 0x35a   :  { %5233 = vmatprep.subr.bf16.mxu0 %v5232_v59  ;;  %v2192_v54 = vpop.f32.mrb[21].mxu1 }
 0x35b   :  { %5007 = vmatprep.mubr.msk.f32.mxu1 %vm2500_vm2, %v2192_v54 }
 0x35c   :  { %5022 = vmatmul.mubr.msk.f32.vlgmr.msra.gmra.mrb[72].mxu0 %vm2500_vm2, %v4887_v33  ;;  %5008 = vmatmul.mubr.msk.f32.vlgmr.msra.gmra.mrb[80].mxu1 %vm2500_vm2, %v4905_v52  ;;  %v5260_v33 = vpack.c.bf16 %v4218_v30, %v4217_v29  ;;  %v5460_v29 = vmov 0.0|0.0   ;;  %v3803_v30 = vld [vmem:[%s6590_s7 + $0x10] sm:$0xff] }
 0x35d   :  { %5024 = vmatprep.mubr.msk.f32.mxu0 %vm2500_vm2, %v2142_v36  ;;  %5235 = vmatpush3.bf16.msra.mxu0 %v5232_v59  ;;  %v4908_v53 = vpop.f32.mrb[22].mxu1 }
 0x35e   :  { %v2202_v55 = vpop.f32.mrb[23].mxu1  ;;  %5237 = vmatprep.subr.bf16.mxu0 %v5236_v50 }
 0x35f   :  { %5010 = vmatprep.mubr.msk.f32.mxu1 %vm2500_vm2, %v2202_v55 }
 0x360   :  { %5025 = vmatmul.mubr.msk.f32.gmra.mrb[74].mxu0 %vm2500_vm2, %v4890_v35  ;;  %5011 = vmatmul.mubr.msk.f32.gmra.mrb[82].mxu1 %vm2500_vm2, %v4908_v53  ;;  %v4228_v35 = vld [vmem:[%s6587_s4 + $0xc8] sm:$0xff]  ;;  %v4242_v53 = vld [vmem:[%s6587_s4 + $0xf8] sm:$0xff] }
 0x361   :  { %5027 = vmatprep.mubr.msk.f32.mxu0 %vm2500_vm2, %v2152_v38  ;;  %5239 = vmatpush3.bf16.msra.mxu0 %v5236_v50  ;;  %v4911_v46 = vpop.f32.mrb[24].mxu1  ;;  %v5264_v38 = vpack.c.bf16 %v4228_v35, %v4227_v34  ;;  %v3805_v34 = vld [vmem:[#allocation2] sm:$0x1]  ;;  %v5463_v35 = vmov 0  }
 0x362   :  { %v2212_v62 = vpop.f32.mrb[25].mxu1  ;;  %5241 = vmatprep.subr.bf16.mxu0 %v5240_v45  ;;  %5431 = vset.pattern.permute.xlu0 %v5463_v35 }
 0x363   :  { %3808 = vperm.xlu0 %5431, %v3805_v34  }
 0x364   :  { %5028 = vmatmul.mubr.msk.f32.gmra.mrb[76].mxu0 %vm2500_vm2, %v4893_v37 }
 0x365   :  { %5030 = vmatprep.mubr.msk.f32.mxu0 %vm2500_vm2, %v2162_v40  ;;  %v4914_v63 = vpop.f32.mrb[26].mxu1 }
 0x366   :  { %v2222_v0 = vpop.f32.mrb[27].mxu1 }
 0x368   :  { %5031 = vmatmul.mubr.msk.f32.gmra.mrb[78].mxu0 %vm2500_vm2, %v4896_v39 }
 0x369   :  { %5041 = vmatprep.mubr.msk.f32.mxu0 %vm2500_vm2, %v2212_v62  ;;  %v4917_v3 = vpop.f32.mrb[28].mxu1  ;;  %v4251_v62 = vld [vmem:[%s6587_s4 + $0x100] sm:$0xff] }
 0x36a   :  { %v2232_v4 = vpop.f32.mrb[29].mxu1 }
 0x36c   :  { %5042 = vmatmul.mubr.msk.f32.vlgmr.msra.gmra.mrb[72].mxu0 %vm2500_vm2, %v4911_v46  ;;  %v5276_v46 = vpack.c.bf16 %v4242_v53, %v4241_v47 }
 0x36d   :  { %5243 = vmatpush3.bf16.msra.mxu0 %v5240_v45  ;;  %5044 = vmatprep.mubr.msk.f32.mxu0 %vm2500_vm2, %v2222_v0  ;;  %v4920_v8 = vpop.f32.mrb[30].mxu1 }
 0x36e   :  { %5245 = vmatprep.subr.bf16.mxu0 %v5244_v5  ;;  %v2242_v9 = vpop.f32.mrb[31].mxu1 }
 0x370   :  { %5045 = vmatmul.mubr.msk.f32.gmra.mrb[74].mxu0 %vm2500_vm2, %v4914_v63  ;;  %v4252_v63 = vld [vmem:[%s6587_s4 + $0x108] sm:$0xff] }
 0x371   :  { %5047 = vmatprep.mubr.msk.f32.mxu0 %vm2500_vm2, %v2232_v4  ;;  %5247 = vmatpush3.bf16.msra.mxu0 %v5244_v5  ;;  %v4923_v11 = vpop.f32.mrb[32].mxu1  ;;  %v5280_v2 = vpack.c.bf16 %v4252_v63, %v4251_v62 }
 0x372   :  { %v2252_v12 = vpop.f32.mrb[33].mxu1  ;;  %5249 = vmatprep.subr.bf16.mxu0 %v5248_v10 }
 0x374   :  { %5048 = vmatmul.mubr.msk.f32.gmra.mrb[76].mxu0 %vm2500_vm2, %v4917_v3 }
 0x375   :  { %5050 = vmatprep.mubr.msk.f32.mxu0 %vm2500_vm2, %v2242_v9  ;;  %v4926_v13 = vpop.f32.mrb[34].mxu1 }
 0x376   :  { %v2262_v14 = vpop.f32.mrb[35].mxu1 }
 0x378   :  { %5051 = vmatmul.mubr.msk.f32.gmra.mrb[78].mxu0 %vm2500_vm2, %v4920_v8  ;;  %v4254_v8 = vld [vmem:[%s6587_s4 + $0x118] sm:$0xff] }
 0x379   :  { %5061 = vmatprep.mubr.msk.f32.mxu0 %vm2500_vm2, %v2252_v12  ;;  %v4929_v17 = vpop.f32.mrb[36].mxu1 }
 0x37a   :  { %v2272_v18 = vpop.f32.mrb[37].mxu1 }
 0x37c   :  { %5062 = vmatmul.mubr.msk.f32.vlgmr.msra.gmra.mrb[72].mxu0 %vm2500_vm2, %v4923_v11  ;;  %v5284_v11 = vpack.c.bf16 %v4254_v8, %v4253_v7 }
 0x37d   :  { %5251 = vmatpush3.bf16.msra.mxu0 %v5248_v10  ;;  %5064 = vmatprep.mubr.msk.f32.mxu0 %vm2500_vm2, %v2262_v14  ;;  %v4932_v22 = vpop.f32.mrb[38].mxu1 }
 0x37e   :  { %5253 = vmatprep.subr.bf16.mxu0 %v5252_v19  ;;  %v2282_v23 = vpop.f32.mrb[39].mxu1 }
 0x380   :  { %5065 = vmatmul.mubr.msk.f32.gmra.mrb[74].mxu0 %vm2500_vm2, %v4926_v13 }
 0x381   :  { %5067 = vmatprep.mubr.msk.f32.mxu0 %vm2500_vm2, %v2272_v18  ;;  %5255 = vmatpush3.bf16.msra.mxu0 %v5252_v19  ;;  %v4935_v25 = vpop.f32.mrb[40].mxu1 }
 0x382   :  { %v2292_v26 = vpop.f32.mrb[41].mxu1  ;;  %5257 = vmatprep.subr.bf16.mxu0 %v5256_v24 }
 0x384   :  { %5068 = vmatmul.mubr.msk.f32.gmra.mrb[76].mxu0 %vm2500_vm2, %v4929_v17 }
 0x385   :  { %5070 = vmatprep.mubr.msk.f32.mxu0 %vm2500_vm2, %v2282_v23  ;;  %v4938_v27 = vpop.f32.mrb[42].mxu1 }
 0x386   :  { %v2302_v28 = vpop.f32.mrb[43].mxu1 }
 0x388   :  { %5071 = vmatmul.mubr.msk.f32.gmra.mrb[78].mxu0 %vm2500_vm2, %v4932_v22 }
 0x389   :  { %5081 = vmatprep.mubr.msk.f32.mxu0 %vm2500_vm2, %v2292_v26  ;;  %v4941_v31 = vpop.f32.mrb[44].mxu1  ;;  %v3801_v26 = vld [vmem:[%s6590_s7] sm:$0xff] }
 0x38a   :  { %v2312_v32 = vpop.f32.mrb[45].mxu1 }
 0x38c   :  { %5082 = vmatmul.mubr.msk.f32.vlgmr.msra.gmra.mrb[72].mxu0 %vm2500_vm2, %v4935_v25 }
 0x38d   :  { %5259 = vmatpush3.bf16.msra.mxu0 %v5256_v24  ;;  %5084 = vmatprep.mubr.msk.f32.mxu0 %vm2500_vm2, %v2302_v28  ;;  %v4944_v36 = vpop.f32.mrb[46].mxu1 }
 0x38e   :  { %5261 = vmatprep.subr.bf16.mxu0 %v5260_v33  ;;  %v2322_v37 = vpop.f32.mrb[47].mxu1 }
 0x390   :  { %5085 = vmatmul.mubr.msk.f32.gmra.mrb[74].mxu0 %vm2500_vm2, %v4938_v27  ;;  %v3802_v27 = vld [vmem:[%s6590_s7 + $0x8] sm:$0xff] }
 0x391   :  { %5087 = vmatprep.mubr.msk.f32.mxu0 %vm2500_vm2, %v2312_v32  ;;  %5263 = vmatpush3.bf16.msra.mxu0 %v5260_v33  ;;  %v4947_v39 = vpop.f32.mrb[48].mxu1  ;;  %v5289_v28 = vpack.c.bf16 %v3802_v27, %v3801_v26  ;;  %v5462_v33 = vmov 0.0  }
 0x392   :  { %v2332_v40 = vpop.f32.mrb[49].mxu1  ;;  %5265 = vmatprep.subr.bf16.mxu0 %v5264_v38 }
 0x394   :  { %5088 = vmatmul.mubr.msk.f32.gmra.mrb[76].mxu0 %vm2500_vm2, %v4941_v31  ;;  %v3804_v31 = vld [vmem:[%s6590_s7 + $0x18] sm:$0xff] }
 0x395   :  { %5090 = vmatprep.mubr.msk.f32.mxu0 %vm2500_vm2, %v2322_v37  ;;  %v4950_v41 = vpop.f32.mrb[50].mxu1  ;;  %v5292_v32 = vpack.c.bf16 %v3804_v31, %v3803_v30 }
 0x396   :  { %v2342_v42 = vpop.f32.mrb[51].mxu1 }
 0x398   :  { %5091 = vmatmul.mubr.msk.f32.gmra.mrb[78].mxu0 %vm2500_vm2, %v4944_v36  ;;  %v4263_v36 = vld [vmem:[%s6588_s5] ss:$0 sm:$0xff] }
 0x399   :  { %5101 = vmatprep.mubr.msk.f32.mxu0 %vm2500_vm2, %v2332_v40  ;;  %v4953_v51 = vpop.f32.mrb[52].mxu1 }
 0x39a   :  { %v2352_v44 = vpop.f32.mrb[53].mxu1 }
 0x39c   :  { %5102 = vmatmul.mubr.msk.f32.vlgmr.msra.gmra.mrb[72].mxu0 %vm2500_vm2, %v4947_v39 }
 0x39d   :  { %5267 = vmatpush3.bf16.msra.mxu0 %v5264_v38  ;;  %5104 = vmatprep.mubr.msk.f32.mxu0 %vm2500_vm2, %v2342_v42  ;;  %v4956_v59 = vpop.f32.mrb[54].mxu1 }
 0x39e   :  { %5269 = vmatprep.subr.bf16.mxu0 %v5268_v58  ;;  %v2362_v57 = vpop.f32.mrb[55].mxu1 }
 0x3a0   :  { %5105 = vmatmul.mubr.msk.f32.gmra.mrb[74].mxu0 %vm2500_vm2, %v4950_v41 }
 0x3a1   :  { %5107 = vmatprep.mubr.msk.f32.mxu0 %vm2500_vm2, %v2352_v44  ;;  %5271 = vmatpush3.bf16.msra.mxu0 %v5268_v58  ;;  %v4959_v52 = vpop.f32.mrb[56].mxu1 }
 0x3a2   :  { %v2372_v54 = vpop.f32.mrb[57].mxu1  ;;  %5273 = vmatprep.subr.bf16.mxu0 %v5272_v56 }
 0x3a4   :  { %5108 = vmatmul.mubr.msk.f32.gmra.mrb[76].mxu0 %vm2500_vm2, %v4953_v51 }
 0x3a5   :  { %5110 = vmatprep.mubr.msk.f32.mxu0 %vm2500_vm2, %v2362_v57  ;;  %v4962_v50 = vpop.f32.mrb[58].mxu1 }
 0x3a6   :  { %v2382_v61 = vpop.f32.mrb[59].mxu1 }
 0x3a8   :  { %5111 = vmatmul.mubr.msk.f32.gmra.mrb[78].mxu0 %vm2500_vm2, %v4956_v59 }
 0x3a9   :  { %5121 = vmatprep.mubr.msk.f32.mxu0 %vm2500_vm2, %v2372_v54  ;;  %v4965_v55 = vpop.f32.mrb[60].mxu1 }
 0x3aa   :  { %v2392_v45 = vpop.f32.mrb[61].mxu1 }
 0x3ac   :  { %5122 = vmatmul.mubr.msk.f32.vlgmr.msra.gmra.mrb[72].mxu0 %vm2500_vm2, %v4959_v52 }
 0x3ad   :  { %5275 = vmatpush3.bf16.msra.mxu0 %v5272_v56  ;;  %5124 = vmatprep.mubr.msk.f32.mxu0 %vm2500_vm2, %v2382_v61  ;;  %v4968_v0 = vpop.f32.mrb[62].mxu1 }
 0x3ae   :  { %5277 = vmatprep.subr.bf16.mxu0 %v5276_v46  ;;  %v2402_v1 = vpop.f32.mrb[63].mxu1 }
 0x3b0   :  { %5125 = vmatmul.mubr.msk.f32.gmra.mrb[74].mxu0 %vm2500_vm2, %v4962_v50 }
 0x3b1   :  { %5127 = vmatprep.mubr.msk.f32.mxu0 %vm2500_vm2, %v2392_v45  ;;  %5279 = vmatpush3.bf16.msra.mxu0 %v5276_v46  ;;  %v4971_v3 = vpop.f32.mrb[64].mxu1 }
 0x3b2   :  { %v2412_v4 = vpop.f32.mrb[65].mxu1  ;;  %5281 = vmatprep.subr.bf16.mxu0 %v5280_v2 }
 0x3b4   :  { %5128 = vmatmul.mubr.msk.f32.gmra.mrb[76].mxu0 %vm2500_vm2, %v4965_v55 }
 0x3b5   :  { %5130 = vmatprep.mubr.msk.f32.mxu0 %vm2500_vm2, %v2402_v1  ;;  %v4974_v5 = vpop.f32.mrb[66].mxu1 }
 0x3b6   :  { %v2422_v6 = vpop.f32.mrb[67].mxu1 }
 0x3b8   :  { %5131 = vmatmul.mubr.msk.f32.gmra.mrb[78].mxu0 %vm2500_vm2, %v4968_v0 }
 0x3b9   :  { %5141 = vmatprep.mubr.msk.f32.mxu0 %vm2500_vm2, %v2412_v4  ;;  %v4977_v9 = vpop.f32.mrb[68].mxu1 }
 0x3ba   :  { %v2432_v10 = vpop.f32.mrb[69].mxu1 }
 0x3bc   :  { %5142 = vmatmul.mubr.msk.f32.vlgmr.msra.gmra.mrb[72].mxu0 %vm2500_vm2, %v4971_v3 }
 0x3bd   :  { %5283 = vmatpush3.bf16.msra.mxu0 %v5280_v2  ;;  %5144 = vmatprep.mubr.msk.f32.mxu0 %vm2500_vm2, %v2422_v6  ;;  %v4980_v12 = vpop.f32.mrb[70].mxu1 }
 0x3be   :  { %5285 = vmatprep.subr.bf16.mxu0 %v5284_v11  ;;  %v2442_v13 = vpop.f32.mrb[71].mxu1 }
 0x3c0   :  { %5145 = vmatmul.mubr.msk.f32.gmra.mrb[74].mxu0 %vm2500_vm2, %v4974_v5 }
 0x3c1   :  { %5147 = vmatprep.mubr.msk.f32.mxu0 %vm2500_vm2, %v2432_v10  ;;  %5287 = vmatpush3.bf16.msra.mxu0 %v5284_v11  ;;  %v4983_v14 = vpop.f32.mrb[72].mxu1 }
 0x3c2   :  { %v2452_v15 = vpop.f32.mrb[73].mxu1  ;;  %5288 = vmatprep.subr.bf16.mxu0 %v5460_v29 }
 0x3c4   :  { %5148 = vmatmul.mubr.msk.f32.gmra.mrb[76].mxu0 %vm2500_vm2, %v4977_v9 }
 0x3c5   :  { %5150 = vmatprep.mubr.msk.f32.mxu0 %vm2500_vm2, %v2442_v13  ;;  %v4986_v16 = vpop.f32.mrb[74].mxu1 }
 0x3c6   :  { %v2462_v17 = vpop.f32.mrb[75].mxu1 }
 0x3c8   :  { %5151 = vmatmul.mubr.msk.f32.gmra.mrb[78].mxu0 %vm2500_vm2, %v4980_v12 }
 0x3c9   :  { %5161 = vmatprep.mubr.msk.f32.mxu0 %vm2500_vm2, %v2452_v15  ;;  %v4989_v18 = vpop.f32.mrb[76].mxu1 }
 0x3ca   :  { %v2472_v19 = vpop.f32.mrb[77].mxu1 }
 0x3cc   :  { %5162 = vmatmul.mubr.msk.f32.vlgmr.msra.gmra.mrb[72].mxu0 %vm2500_vm2, %v4983_v14 }
 0x3cd   :  { %5164 = vmatprep.mubr.msk.f32.mxu0 %vm2500_vm2, %v2462_v17  ;;  %v4992_v20 = vpop.f32.mrb[78].mxu1  ;;  %5290 = vmatpush3.bf16.msra.mxu0 %v5289_v28 }
 0x3ce   :  { %v2482_v21 = vpop.f32.mrb[79].mxu1  ;;  %5291 = vmatprep.subr.bf16.mxu0 %v5460_v29 }
 0x3d0   :  { %5165 = vmatmul.mubr.msk.f32.gmra.mrb[74].mxu0 %vm2500_vm2, %v4986_v16 }
 0x3d1   :  { %5167 = vmatprep.mubr.msk.f32.mxu0 %vm2500_vm2, %v2472_v19  ;;  %5293 = vmatpush3.bf16.msra.mxu0 %v5292_v32 }
 0x3d4   :  { %5168 = vmatmul.mubr.msk.f32.gmra.mrb[76].mxu0 %vm2500_vm2, %v4989_v18 }
 0x3d5   :  { %5170 = vmatprep.mubr.msk.f32.mxu0 %vm2500_vm2, %v2482_v21 }
 0x3d8   :  { %5171 = vmatmul.mubr.msk.f32.gmra.mrb[78].mxu0 %vm2500_vm2, %v4992_v20 }
 0x3d9   :  { %5181 = vmatprep.mubr.msk.f32.mxu0 %vm5461_vm3, %v5462_v33 }
 0x3e2   :  { %v3809_v28 = vpop.permute.xlu0 %3808 }
 0x42f   :  { %v5009_v22 = vpop.f32.mrb[80].mxu1 }
 0x430   :  { %v2611_v23 = vpop.f32.mrb[81].mxu1 }
 0x433   :  { %v5012_v24 = vpop.f32.mrb[82].mxu1 }
 0x434   :  { %v2621_v25 = vpop.f32.mrb[83].mxu1 }
 0x49f   :  { %v5163_v37 = vpop.f32.mrb[72].mxu0 }
 0x4a0   :  { %v3761_v38 = vadd.f32 %v5163_v37, %v4263_v36  ;;  %v3706_v39 = vpop.f32.mrb[73].mxu0 }
 0x4a1   :  { %v3760_v40 = vadd.f32 %v4263_v36, %v3706_v39 }
 0x4a2   :  { %v3769_v41 = vmax.f32 %v3761_v38, 0.0 }
 0x4a3   :  { %v3768_v42 = vmax.f32 %v3760_v40, 0.0  ;;  %v5166_v43 = vpop.f32.mrb[74].mxu0 }
 0x4a4   :  { %v3777_v49 = vsel %vm2500_vm2, %v3769_v41, 0.0  ;;  %v3763_v51 = vadd.f32 %v5166_v43, %v4263_v36  ;;  %v3716_v44 = vpop.f32.mrb[75].mxu0 }
 0x4a5   :  { %v3776_v58 = vsel %vm2500_vm2, %v3768_v42, 0.0  ;;  %v3762_v60 = vadd.f32 %v4263_v36, %v3716_v44 }
 0x4a6   :  { %v3778_v48 = vadd.f32 %v3777_v49, %v3776_v58  ;;  %v3771_v59 = vmax.f32 %v3763_v51, 0.0 }
 0x4a7   :  { %v3770_v57 = vmax.f32 %v3762_v60, 0.0  ;;  %v5169_v56 = vpop.f32.mrb[76].mxu0 }
 0x4a8   :  { %v5298_v52 = vadd.f32 %v5169_v56, %v5009_v22  ;;  %v3726_v54 = vpop.f32.mrb[77].mxu0  ;;  %v3781_v55 = vsel %vm2500_vm2, %v3771_v59, 0.0  ;;  %v3799_v22 = vld [vmem:[%s6589_s6] sm:$0x1]  ;;  %s3902_s6 = sshll.u32 %s5464_s12, 4  ;;  %s3903_s6 = int_to_ptr.vmem [resolvable:$true] %s3902_s6 }
 0x4a9   :  { %v3779_v50 = vsel %vm2500_vm2, %v3770_v57, 0.0  ;;  %v5299_v61 = vadd.f32 %v3726_v54, %v2611_v23  ;;  %s5436_s3 = scalar_lea.vmem %s3903_s6, 16  ;;  %s5440_s13 = scalar_lea.vmem %s3903_s6, 32 }
 0x4aa   :  { %v3780_v47 = vadd.f32 %v3779_v50, %v3778_v48  ;;  %v3765_v53 = vadd.f32 %v5298_v52, %v4263_v36  ;;  %p5437_p0 = scmp.ne.s32.totalorder %s3903_s6, %s5436_s3  ;;  %p5441_p1 = scmp.lt.s32.totalorder %s3903_s6, %s3903_s6 }
 0x4ab   :  { %v3764_v45 = vadd.f32 %v5299_v61, %v4263_v36  ;;  %v5172_v46 = vpop.f32.mrb[78].mxu0  ;;  %p5442_p2 = scmp.lt.s32.totalorder %s5440_s13, %s5436_s3 }
 0x4ac   :  { %v3782_v62 = vadd.f32 %v3781_v55, %v3780_v47  ;;  %v5300_v63 = vadd.f32 %v5172_v46, %v5012_v24  ;;  %v3736_v0 = vpop.f32.mrb[79].mxu0  ;;  %v3773_v1 = vmax.f32 %v3765_v53, 0.0 }
 0x4ad   :  { %v3772_v2 = vmax.f32 %v3764_v45, 0.0  ;;  %v5301_v3 = vadd.f32 %v3736_v0, %v2621_v25  ;;  %v3811_v25 = vlaneseq  ;;  %p5443_p3 = por %p5442_p2, %p5441_p1 }
 0x4ae   :  { %v3767_v4 = vadd.f32 %v5300_v63, %v4263_v36  ;;  %v3785_v8 = vsel %vm2500_vm2, %v3773_v1, 0.0 }
 0x4af   :  { %v3783_v5 = vsel %vm2500_vm2, %v3772_v2, 0.0  ;;  %v3766_v6 = vadd.f32 %v5301_v3, %v4263_v36  ;;  %v3812_v26 = vshrl.u32 %v3811_v25, 7  ;;  %p5444_p4 = pnand %p5443_p3, %p5437_p0 }
 0x4b0   :  { %v3784_v7 = vadd.f32 %v3783_v5, %v3782_v62  ;;  %v3775_v9 = vmax.f32 %v3767_v4, 0.0 }
 0x4b1   :  { %v3774_v10 = vmax.f32 %v3766_v6, 0.0  ;;  %v3813_v27 = vsub.s32 0, %v3812_v26 }
 0x4b2   :  { %v3786_v11 = vadd.f32 %v3785_v8, %v3784_v7  ;;  %v3789_v14 = vsel %vm2500_vm2, %v3775_v9, 0.0 }
 0x4b3   :  { %v3787_v12 = vsel %vm2500_vm2, %v3774_v10, 0.0  ;;  %v3814_v29 = vrot.slane %v3809_v28, %v3813_v27 }
 0x4b4   :  { %v3788_v13 = vadd.f32 %v3787_v12, %v3786_v11 }
 0x4b6   :  { %v3790_v15 = vadd.f32 %v3789_v14, %v3788_v13 }
 0x4b8   :  { %v3791_v16 = vrot.slane %v3790_v15, 4 }
 0x4ba   :  { %v3792_v17 = vadd.f32 %v3791_v16, %v3790_v15 }
 0x4bc   :  { %v3793_v18 = vrot.slane %v3792_v17, 2 }
 0x4be   :  { %v3794_v19 = vadd.f32 %v3793_v18, %v3792_v17 }
 0x4c0   :  { %v3795_v20 = vrot.slane %v3794_v19, 1 }
 0x4c2   :  { %v3796_v21 = vadd.f32 %v3795_v20, %v3794_v19 }
 0x4c4   :  { %v3798_v23 = vmul.f32 0.015625, %v3796_v21 }
 0x4c6   :  { %v3800_v24 = vmul.f32 %v3799_v22, %v3798_v23 }
 0x4c8   :  { %5182 = vmatmul.mubr.msk.f32.vlgmr.msra.gmra.mrb[80].mxu0 %vm2500_vm2, %v3800_v24 }
 0x59b   :  { %v3884_v30 = vpop.f32.mrb[80].mxu0 }
 0x59c   :  { %v3885_v31 = vadd.f32 %v3884_v30, %v3814_v29  ;;  %v5183_v32 = vpop.f32.mrb[81].mxu0 }
 0x59e   :  { %v3888_v33 = vsub.f32 0.0, %v3885_v31 }
 0x5a0   :  { %v3889_v34 = vmul.f32 1.442695, %v3888_v33 }
 0x5a2   :  { %5432 = vpow2.f32 %v3889_v34 }
 0x5ac   :  { %v5433_v35 = vpop.eup %5432 }
 0x5ad   :  { %v3891_v36 = vadd.f32 1.0, %v5433_v35 }
 0x5af   :  { %5434 = vrcp.f32 %v3891_v36 }
 0x5b9   :  { %v5435_v37 = vpop.eup %5434 }
 0x5ba   :  { %3895 = vst.msk [vmem:[#allocation3] sm:$0x1] %vm3894_vm4, %v5435_v37 }
 0x5bb   :  { %5447 = shalt.err (!%p5444_p4)
}
 0x5bc   :  { %s5448_s16 = scalar_lea.hbm %s6592_s9, 16 }
 0x5bd   :  { %p5449_p5 = scmp.ne.s32.totalorder %s6592_s9, %s5448_s16  ;;  %p5452_p6 = scmp.lt.u32.totalorder %s5448_s16, %s6592_s9 }
 0x5bf   :  { %p5454_p7 = pnand %p5452_p6, %p5449_p5 }
 0x5c1   :  { %5457 = shalt.err (!%p5454_p7)
}
 0x5c2   :  { %3905 = dma.vmem_to_hbm [thread:$0]  %s3903_s6, 16, %s6592_s9, [#allocation4]  }
 0x5c3   :  { %5458 = dma.done.wait [#allocation4], 16  }
 0x5c4   :  { %5459 = vsyncadd [#allocation4], 4294967280 }
 0x5c5   :  { %3909 = vsyncpa [#allocation4], 1 }

</bundles_post_ra>
